<compile_context>
chip_gen: v5e
topology: v5e:2x2
jax: 0.10.0
libtpu: 0.0.40
codegen_flags: <defaults>
</compile_context>

<pallas_src>
import functools

import jax
import jax.numpy as jnp
from jax.experimental import pallas as pl
from jax.experimental.pallas import tpu as pltpu


# ----------------------------------------------------------------------------
# Kernel
# ----------------------------------------------------------------------------
def _vae_kernel(Hp, Lp, L, P, S, out_pad,
                ma_ref, x_ref,
                w0, b0,
                e1_w, e1_b, e2_w, e2_b,
                enc_w, enc_b,
                d0con_w, d0con_b,
                d1_w, d1_b, d2_w, d2_b,
                dec_w, dec_b,
                dso_w, dso_b,
                out_ref):
    f32 = jnp.float32
    bf16 = jnp.bfloat16

    def mm(x, w_ref):
        # bf16 MXU matmul, f32 accumulation.
        return jnp.dot(x.astype(bf16), w_ref[...], preferred_element_type=f32)

    max_action = ma_ref[0, 0]
    x = x_ref[...]                       # (tb, in_pad) = [noise | state | action | ap | 0]

    # ---- fused first layer: [e0_dis | d0_dis | e0_con] in one matmul -------
    h0 = jax.nn.relu(mm(x, w0) + b0[...])          # (tb, 3*Hp)
    z_dis = h0[:, :Hp]
    v_dis = h0[:, Hp:2 * Hp]
    z_con = h0[:, 2 * Hp:]

    # ---------------- encode ----------------
    z = z_dis * z_con
    z = jax.nn.relu(mm(z, e1_w) + e1_b[...])
    z = jax.nn.relu(mm(z, e2_w) + e2_b[...])

    enc = mm(z, enc_w) + enc_b[...]                # (tb, 2*Lp) = [mean | log_std]
    mean_f = enc[:, :Lp]
    logstd_f = enc[:, Lp:]
    std_f = jnp.clip(jax.nn.softplus(logstd_f), 0.01, 0.6)

    # noise lives in lanes [0, L) of x; lanes >= L hold other inputs / zeros, but
    # those lanes of z_lat are killed by the zero rows [L:Lp) of d0con_w.
    noise_f = x[:, :Lp]
    z_lat = mean_f + std_f * noise_f               # torch.rand_like -> uniform noise

    # ---------------- decode ----------------
    v_con = jax.nn.relu(mm(z_lat, d0con_w) + d0con_b[...])
    v = v_dis * v_con
    v = jax.nn.relu(mm(v, d1_w) + d1_b[...])
    v = jax.nn.relu(mm(v, d2_w) + d2_b[...])

    # Fused [d3 | parameter_action_output] head (both consume v after d2's relu,
    # matching the PyTorch order; d3 first so the Hp slice is lane-tile aligned).
    dec = mm(v, dec_w) + dec_b[...]                # (tb, Hp + Pp)
    v3 = jax.nn.relu(dec[:, :Hp])
    parameter_action = dec[:, Hp:Hp + P]

    delta_s = (mm(v3, dso_w) + dso_b[...])[:, :S]

    u = max_action * jnp.tanh(parameter_action)
    s = jnp.tanh(delta_s)
    mean = mean_f[:, :L]
    std = std_f[:, :L]

    # Single lane-dense store: [u | s | mean | std | zero-pad] -> width out_pad.
    tb = u.shape[0]
    valid = P + S + 2 * L
    pieces = [u, s, mean, std]
    if out_pad > valid:
        pieces.append(jnp.zeros((tb, out_pad - valid), f32))
    out_ref[...] = jnp.concatenate(pieces, axis=-1)


# ----------------------------------------------------------------------------
# Wrapper
# ----------------------------------------------------------------------------
def vae_forward(params, meta, state, action, action_parameter, noise, max_action,
                *, tile_b=256):
    """Full VAE.forward (encode + decode) in one Pallas call.

    Returns (u, s, mean, std) with the same shapes/semantics as the PyTorch
    module's forward (mean/std are the encoder outputs).
    """
    B, S = state.shape
    AE = action.shape[1]
    P = action_parameter.shape[1]
    L = noise.shape[1]
    Hp, Lp, Pp, Sp, in_pad = (meta["Hp"], meta["Lp"], meta["Pp"], meta["Sp"],
                              meta["in_pad"])

    out_valid = P + S + 2 * L
    out_pad = max(128, pl.cdiv(out_valid, 128) * 128)

    # Batch tile: multiple of 8 (f32 sublanes), capped at tile_b; pad the batch.
    tb = min(tile_b, ((B + 7) // 8) * 8)
    tb = max(8, (tb // 8) * 8)
    Bp = pl.cdiv(B, tb) * tb

    # Pack all batched inputs into one lane-dense slab: [noise|state|action|ap|0].
    x = jnp.zeros((Bp, in_pad), jnp.float32)
    x = x.at[:B, :L].set(noise)
    x = x.at[:B, L:L + S].set(state)
    x = x.at[:B, L + S:L + S + AE].set(action)
    x = x.at[:B, L + S + AE:L + S + AE + P].set(action_parameter)

    ma = jnp.asarray(max_action, jnp.float32).reshape(1, 1)

    grid = (Bp // tb,)

    def batched(d):
        return pl.BlockSpec((tb, d), lambda i: (i, 0))

    def resident(p):
        return pl.BlockSpec(p.shape, lambda i: (0, 0))

    in_specs = (
        [pl.BlockSpec(memory_space=pltpu.MemorySpace.SMEM)]   # max_action scalar
        + [batched(in_pad)]
        + [resident(p) for p in params]
    )
    out_specs = pl.BlockSpec((tb, out_pad), lambda i: (i, 0))
    out_shape = jax.ShapeDtypeStruct((Bp, out_pad), jnp.float32)

    # Advisory cost estimate (9 fused matmuls, softplus + tanh epilogue).
    mm_dims = [(in_pad, 3 * Hp), (Hp, Hp), (Hp, Hp), (Hp, 2 * Lp), (Lp, Hp),
               (Hp, Hp), (Hp, Hp), (Hp, Hp + Pp), (Hp, Sp)]
    flops = 2 * Bp * sum(k * n for k, n in mm_dims)
    transcendentals = Bp * (2 * Lp + Pp + Sp)
    w_bytes = int(sum(int(p.size) * p.dtype.itemsize for p in params))
    bytes_accessed = 4 * Bp * in_pad + w_bytes + 4 * Bp * out_pad + 4
    cost = pl.CostEstimate(flops=flops, transcendentals=transcendentals,
                           bytes_accessed=bytes_accessed)

    packed = pl.pallas_call(
        functools.partial(_vae_kernel, Hp, Lp, L, P, S, out_pad),
        grid=grid,
        in_specs=in_specs,
        out_specs=out_specs,
        out_shape=out_shape,
        compiler_params=pltpu.CompilerParams(
            dimension_semantics=("parallel",),
            vmem_limit_bytes=32 * 1024 * 1024),
        cost_estimate=cost,
    )(ma, x, *params)

    u = packed[:B, :P]
    s = packed[:B, P:P + S]
    mean = packed[:B, P + S:P + S + L]
    std = packed[:B, P + S + L:P + S + 2 * L]
    return u, s, mean, std


# ----------------------------------------------------------------------------
# Parameter construction (mimics nn.Linear init), fusion & TPU padding
# ----------------------------------------------------------------------------
def _init_linear(key, in_dim, out_dim):
    kw, kb = jax.random.split(key)
    bound = 1.0 / float(in_dim) ** 0.5
    w = jax.random.uniform(kw, (in_dim, out_dim), jnp.float32, -bound, bound)
    b = jax.random.uniform(kb, (1, out_dim), jnp.float32, -bound, bound)
    return w, b


def init_raw_params(key, state_dim, action_embedding_dim, parameter_action_dim,
                    latent_dim, hidden_size):
    keys = jax.random.split(key, 13)
    S, AE, P, L, H = (state_dim, action_embedding_dim, parameter_action_dim,
                      latent_dim, hidden_size)
    raw = {
        "e0_dis": _init_linear(keys[0], S + AE, H),
        "e0_con": _init_linear(keys[1], P, H),
        "e1": _init_linear(keys[2], H, H),
        "e2": _init_linear(keys[3], H, H),
        "mean": _init_linear(keys[4], H, L),
        "log_std": _init_linear(keys[5], H, L),
        "d0_dis": _init_linear(keys[6], S + AE, H),
        "d0_con": _init_linear(keys[7], L, H),
        "d1": _init_linear(keys[8], H, H),
        "d2": _init_linear(keys[9], H, H),
        "pao": _init_linear(keys[10], H, P),
        "d3": _init_linear(keys[11], H, H),
        "dso": _init_linear(keys[12], H, S),
    }
    return raw, (S, AE, P, L, H)


def prepare_params(raw, dims, lane=128, matmul_dtype=jnp.bfloat16):
    """Fuse shared-input layers, zero-pad every contracted/output dim to a
    multiple of 128 lanes, and cast matmul weights to bf16 (biases stay f32).
    Semantics are preserved exactly (pad weights/biases are zero)."""
    S, AE, P, L, H = dims

    def rup(n):
        return ((n + lane - 1) // lane) * lane

    Hp, Lp, Pp, Sp = rup(H), rup(L), rup(P), rup(S)
    in_pad = rup(L + S + AE + P)

    def w(x):
        return x.astype(matmul_dtype)

    # Fused layer 0: packed input [noise | state | action | ap | 0] ->
    # [e0_dis(cat(state,action)) | d0_dis(cat(state,action)) | e0_con(ap)].
    e0dis_w, e0dis_b = raw["e0_dis"]
    d0dis_w, d0dis_b = raw["d0_dis"]
    e0con_w, e0con_b = raw["e0_con"]
    w0 = jnp.zeros((in_pad, 3 * Hp), jnp.float32)
    w0 = w0.at[L:L + S + AE, 0:H].set(e0dis_w)
    w0 = w0.at[L:L + S + AE, Hp:Hp + H].set(d0dis_w)
    w0 = w0.at[L + S + AE:L + S + AE + P, 2 * Hp:2 * Hp + H].set(e0con_w)
    b0 = jnp.zeros((1, 3 * Hp), jnp.float32)
    b0 = b0.at[:, 0:H].set(e0dis_b)
    b0 = b0.at[:, Hp:Hp + H].set(d0dis_b)
    b0 = b0.at[:, 2 * Hp:2 * Hp + H].set(e0con_b)

    def square(name):
        wt, bt = raw[name]
        wp = jnp.zeros((Hp, Hp), jnp.float32).at[:H, :H].set(wt)
        bp = jnp.zeros((1, Hp), jnp.float32).at[:, :H].set(bt)
        return w(wp), bp

    e1_w, e1_b = square("e1")
    e2_w, e2_b = square("e2")
    d1_w, d1_b = square("d1")
    d2_w, d2_b = square("d2")

    # Fused encoder head: [mean | log_std], each padded to Lp lanes.
    mean_w, mean_b = raw["mean"]
    ls_w, ls_b = raw["log_std"]
    enc_w = jnp.zeros((Hp, 2 * Lp), jnp.float32)
    enc_w = enc_w.at[:H, :L].set(mean_w)
    enc_w = enc_w.at[:H, Lp:Lp + L].set(ls_w)
    enc_b = jnp.zeros((1, 2 * Lp), jnp.float32)
    enc_b = enc_b.at[:, :L].set(mean_b)
    enc_b = enc_b.at[:, Lp:Lp + L].set(ls_b)

    # d0_con: rows padded to Lp (zero rows kill the garbage lanes of z_lat).
    d0con_w_raw, d0con_b_raw = raw["d0_con"]
    d0con_w = jnp.zeros((Lp, Hp), jnp.float32).at[:L, :H].set(d0con_w_raw)
    d0con_b = jnp.zeros((1, Hp), jnp.float32).at[:, :H].set(d0con_b_raw)

    # Fused decoder head: [d3 | parameter_action_output].
    d3_w, d3_b = raw["d3"]
    pao_w, pao_b = raw["pao"]
    dec_w = jnp.zeros((Hp, Hp + Pp), jnp.float32)
    dec_w = dec_w.at[:H, :H].set(d3_w)
    dec_w = dec_w.at[:H, Hp:Hp + P].set(pao_w)
    dec_b = jnp.zeros((1, Hp + Pp), jnp.float32)
    dec_b = dec_b.at[:, :H].set(d3_b)
    dec_b = dec_b.at[:, Hp:Hp + P].set(pao_b)

    # delta_state_output.
    dso_w_raw, dso_b_raw = raw["dso"]
    dso_w = jnp.zeros((Hp, Sp), jnp.float32).at[:H, :S].set(dso_w_raw)
    dso_b = jnp.zeros((1, Sp), jnp.float32).at[:, :S].set(dso_b_raw)

    params = (w(w0), b0,
              e1_w, e1_b, e2_w, e2_b,
              w(enc_w), enc_b,
              w(d0con_w), d0con_b,
              d1_w, d1_b, d2_w, d2_b,
              w(dec_w), dec_b,
              w(dso_w), dso_b)
    meta = dict(Hp=Hp, Lp=Lp, Pp=Pp, Sp=Sp, in_pad=in_pad)
    return params, meta


# ----------------------------------------------------------------------------
# Pure-JAX reference (f32, unfused) for correctness checking
# ----------------------------------------------------------------------------
def vae_forward_ref(raw, state, action, ap, noise, max_action):
    def lin(name, x):
        w, b = raw[name]
        return x @ w + b

    sa = jnp.concatenate([state, action], axis=1)
    z_dis = jax.nn.relu(lin("e0_dis", sa))
    z_con = jax.nn.relu(lin("e0_con", ap))
    z = z_dis * z_con
    z = jax.nn.relu(lin("e1", z))
    z = jax.nn.relu(lin("e2", z))
    mean = lin("mean", z)
    log_std = lin("log_std", z)
    std = jnp.clip(jax.nn.softplus(log_std), 0.01, 0.6)
    z_lat = mean + std * noise
    v_dis = jax.nn.relu(lin("d0_dis", sa))
    v_con = jax.nn.relu(lin("d0_con", z_lat))
    v = v_dis * v_con
    v = jax.nn.relu(lin("d1", v))
    v = jax.nn.relu(lin("d2", v))
    pa = lin("pao", v)
    v3 = jax.nn.relu(lin("d3", v))
    ds = lin("dso", v3)
    return (max_action * jnp.tanh(pa), jnp.tanh(ds), mean, std)


# ----------------------------------------------------------------------------
if __name__ == "__main__":
    B = 2
    state_dim = 8
    action_dim = 5                  # only sizes the (unused-in-forward) embedding table
    action_embedding_dim = 4
    parameter_action_dim = 4
    latent_dim = 6
    hidden_size = 32
    max_action = 1.0

    key = jax.random.PRNGKey(0)
    kp, kemb, ks, ka, kap, kn = jax.random.split(key, 6)

    raw, dims = init_raw_params(kp, state_dim, action_embedding_dim,
                                parameter_action_dim, latent_dim, hidden_size)
    params, meta = prepare_params(raw, dims)

    # self.embeddings parameter (not used in forward(); kept for parity).
    # TODO(synk): embedding lookup (action index -> embedding row) happens outside
    # forward() in the original code; we pass the looked-up embedding directly.
    embeddings = jax.random.normal(kemb, (action_dim, action_embedding_dim),
                                   jnp.float32)

    # forward() inputs: `action` is an already-looked-up embedding vector,
    # since cat([state, action], 1) feeds a Linear of width S + AE.
    state = jax.random.normal(ks, (B, state_dim), jnp.float32)
    action = jax.random.normal(ka, (B, action_embedding_dim), jnp.float32)
    action_parameter = jax.random.normal(kap, (B, parameter_action_dim),
                                         jnp.float32)
    noise = jax.random.uniform(kn, (B, latent_dim), jnp.float32)  # rand_like

    u, s, mean, std = vae_forward(params, meta, state, action, action_parameter,
                                  noise, max_action)
    jax.block_until_ready((u, s, mean, std))

    assert u.shape == (B, parameter_action_dim)
    assert s.shape == (B, state_dim)
    assert mean.shape == (B, latent_dim)
    assert std.shape == (B, latent_dim)

    u_r, s_r, mean_r, std_r = vae_forward_ref(raw, state, action,
                                              action_parameter, noise,
                                              max_action)
    import numpy as np
    np.testing.assert_allclose(np.asarray(u), np.asarray(u_r), atol=5e-2, rtol=5e-2)
    np.testing.assert_allclose(np.asarray(s), np.asarray(s_r), atol=5e-2, rtol=5e-2)
    np.testing.assert_allclose(np.asarray(mean), np.asarray(mean_r), atol=5e-2, rtol=5e-2)
    np.testing.assert_allclose(np.asarray(std), np.asarray(std_r), atol=5e-2, rtol=5e-2)
    assert bool(jnp.all(jnp.isfinite(u))) and bool(jnp.all(jnp.isfinite(std)))
    print("KERNEL_OK")
</pallas_src>

<mosaic_0001>
module attributes {stable_mosaic.version = 11 : i64} {
  func.func @_vae_kernel(%arg0: i32, %arg1: memref<1x1xf32, #tpu.memory_space<smem>>, %arg2: memref<8x128xf32, #tpu.memory_space<vmem>>, %arg3: memref<128x384xbf16, #tpu.memory_space<vmem>>, %arg4: memref<1x384xf32, #tpu.memory_space<vmem>>, %arg5: memref<128x128xbf16, #tpu.memory_space<vmem>>, %arg6: memref<1x128xf32, #tpu.memory_space<vmem>>, %arg7: memref<128x128xbf16, #tpu.memory_space<vmem>>, %arg8: memref<1x128xf32, #tpu.memory_space<vmem>>, %arg9: memref<128x256xbf16, #tpu.memory_space<vmem>>, %arg10: memref<1x256xf32, #tpu.memory_space<vmem>>, %arg11: memref<128x128xbf16, #tpu.memory_space<vmem>>, %arg12: memref<1x128xf32, #tpu.memory_space<vmem>>, %arg13: memref<128x128xbf16, #tpu.memory_space<vmem>>, %arg14: memref<1x128xf32, #tpu.memory_space<vmem>>, %arg15: memref<128x128xbf16, #tpu.memory_space<vmem>>, %arg16: memref<1x128xf32, #tpu.memory_space<vmem>>, %arg17: memref<128x256xbf16, #tpu.memory_space<vmem>>, %arg18: memref<1x256xf32, #tpu.memory_space<vmem>>, %arg19: memref<128x128xbf16, #tpu.memory_space<vmem>>, %arg20: memref<1x128xf32, #tpu.memory_space<vmem>>, %arg21: memref<8x128xf32, #tpu.memory_space<vmem>>) attributes {dimension_semantics = [#tpu.dimension_semantics<parallel>], iteration_bounds = array<i64: 1>, scalar_prefetch = 0 : i64, scratch_operands = 0 : i64, tpu.core_type = #tpu.core_type<tc>, window_params = [{transform_indices = @transform_0, window_bounds = array<i64: 1, 1>}, {transform_indices = @transform_1, window_bounds = array<i64: 8, 128>}, {pipeline_mode = #tpu.pipeline_mode<synchronous>, transform_indices = @transform_2, window_bounds = array<i64: 128, 384>}, {pipeline_mode = #tpu.pipeline_mode<synchronous>, transform_indices = @transform_3, window_bounds = array<i64: 1, 384>}, {pipeline_mode = #tpu.pipeline_mode<synchronous>, transform_indices = @transform_4, window_bounds = array<i64: 128, 128>}, {pipeline_mode = #tpu.pipeline_mode<synchronous>, transform_indices = @transform_5, window_bounds = array<i64: 1, 128>}, {pipeline_mode = #tpu.pipeline_mode<synchronous>, transform_indices = @transform_6, window_bounds = array<i64: 128, 128>}, {pipeline_mode = #tpu.pipeline_mode<synchronous>, transform_indices = @transform_7, window_bounds = array<i64: 1, 128>}, {pipeline_mode = #tpu.pipeline_mode<synchronous>, transform_indices = @transform_8, window_bounds = array<i64: 128, 256>}, {pipeline_mode = #tpu.pipeline_mode<synchronous>, transform_indices = @transform_9, window_bounds = array<i64: 1, 256>}, {pipeline_mode = #tpu.pipeline_mode<synchronous>, transform_indices = @transform_10, window_bounds = array<i64: 128, 128>}, {pipeline_mode = #tpu.pipeline_mode<synchronous>, transform_indices = @transform_11, window_bounds = array<i64: 1, 128>}, {pipeline_mode = #tpu.pipeline_mode<synchronous>, transform_indices = @transform_12, window_bounds = array<i64: 128, 128>}, {pipeline_mode = #tpu.pipeline_mode<synchronous>, transform_indices = @transform_13, window_bounds = array<i64: 1, 128>}, {pipeline_mode = #tpu.pipeline_mode<synchronous>, transform_indices = @transform_14, window_bounds = array<i64: 128, 128>}, {pipeline_mode = #tpu.pipeline_mode<synchronous>, transform_indices = @transform_15, window_bounds = array<i64: 1, 128>}, {pipeline_mode = #tpu.pipeline_mode<synchronous>, transform_indices = @transform_16, window_bounds = array<i64: 128, 256>}, {pipeline_mode = #tpu.pipeline_mode<synchronous>, transform_indices = @transform_17, window_bounds = array<i64: 1, 256>}, {pipeline_mode = #tpu.pipeline_mode<synchronous>, transform_indices = @transform_18, window_bounds = array<i64: 128, 128>}, {pipeline_mode = #tpu.pipeline_mode<synchronous>, transform_indices = @transform_19, window_bounds = array<i64: 1, 128>}, {transform_indices = @transform_20, window_bounds = array<i64: 8, 128>}]} {
    %c0 = arith.constant 0 : index
    %c0_0 = arith.constant 0 : index
    %0 = memref.load %arg1[%c0, %c0_0] : memref<1x1xf32, #tpu.memory_space<smem>>
    %c0_1 = arith.constant 0 : index
    %c0_2 = arith.constant 0 : index
    %1 = vector.load %arg2[%c0_1, %c0_2] : memref<8x128xf32, #tpu.memory_space<vmem>>, vector<8x128xf32>
    %2 = arith.truncf %1 : vector<8x128xf32> to vector<8x128xbf16>
    %c0_3 = arith.constant 0 : index
    %c0_4 = arith.constant 0 : index
    %3 = vector.load %arg3[%c0_3, %c0_4] : memref<128x384xbf16, #tpu.memory_space<vmem>>, vector<128x384xbf16>
    %cst = arith.constant dense<0.000000e+00> : vector<8x384xf32>
    %4 = tpu.matmul %2, %3, %cst {dimension_numbers = #tpu.dot_dimension_numbers<[1], [0], [0], [1], [0, 0, 1, 1], [], []>} : vector<8x128xbf16>, vector<128x384xbf16>, vector<8x384xf32> -> vector<8x384xf32>
    %c0_5 = arith.constant 0 : index
    %c0_6 = arith.constant 0 : index
    %5 = vector.load %arg4[%c0_5, %c0_6] : memref<1x384xf32, #tpu.memory_space<vmem>>, vector<1x384xf32>
    %6 = vector.broadcast %5 : vector<1x384xf32> to vector<8x384xf32>
    %7 = arith.addf %4, %6 : vector<8x384xf32>
    %cst_7 = arith.constant 0.000000e+00 : f32
    %8 = vector.broadcast %cst_7 : f32 to vector<8x384xf32>
    %9 = arith.maximumf %7, %8 : vector<8x384xf32>
    %10 = vector.extract_strided_slice %9 {offsets = [0, 0], sizes = [8, 128], strides = [1, 1]} : vector<8x384xf32> to vector<8x128xf32>
    %11 = vector.extract_strided_slice %9 {offsets = [0, 128], sizes = [8, 128], strides = [1, 1]} : vector<8x384xf32> to vector<8x128xf32>
    %12 = vector.extract_strided_slice %9 {offsets = [0, 256], sizes = [8, 128], strides = [1, 1]} : vector<8x384xf32> to vector<8x128xf32>
    %13 = arith.mulf %10, %12 : vector<8x128xf32>
    %14 = arith.truncf %13 : vector<8x128xf32> to vector<8x128xbf16>
    %c0_8 = arith.constant 0 : index
    %c0_9 = arith.constant 0 : index
    %15 = vector.load %arg5[%c0_8, %c0_9] : memref<128x128xbf16, #tpu.memory_space<vmem>>, vector<128x128xbf16>
    %cst_10 = arith.constant dense<0.000000e+00> : vector<8x128xf32>
    %16 = tpu.matmul %14, %15, %cst_10 {dimension_numbers = #tpu.dot_dimension_numbers<[1], [0], [0], [1], [0, 0, 1, 1], [], []>} : vector<8x128xbf16>, vector<128x128xbf16>, vector<8x128xf32> -> vector<8x128xf32>
    %c0_11 = arith.constant 0 : index
    %c0_12 = arith.constant 0 : index
    %17 = vector.load %arg6[%c0_11, %c0_12] : memref<1x128xf32, #tpu.memory_space<vmem>>, vector<1x128xf32>
    %18 = vector.broadcast %17 : vector<1x128xf32> to vector<8x128xf32>
    %19 = arith.addf %16, %18 : vector<8x128xf32>
    %cst_13 = arith.constant 0.000000e+00 : f32
    %20 = vector.broadcast %cst_13 : f32 to vector<8x128xf32>
    %21 = arith.maximumf %19, %20 : vector<8x128xf32>
    %22 = arith.truncf %21 : vector<8x128xf32> to vector<8x128xbf16>
    %c0_14 = arith.constant 0 : index
    %c0_15 = arith.constant 0 : index
    %23 = vector.load %arg7[%c0_14, %c0_15] : memref<128x128xbf16, #tpu.memory_space<vmem>>, vector<128x128xbf16>
    %cst_16 = arith.constant dense<0.000000e+00> : vector<8x128xf32>
    %24 = tpu.matmul %22, %23, %cst_16 {dimension_numbers = #tpu.dot_dimension_numbers<[1], [0], [0], [1], [0, 0, 1, 1], [], []>} : vector<8x128xbf16>, vector<128x128xbf16>, vector<8x128xf32> -> vector<8x128xf32>
    %c0_17 = arith.constant 0 : index
    %c0_18 = arith.constant 0 : index
    %25 = vector.load %arg8[%c0_17, %c0_18] : memref<1x128xf32, #tpu.memory_space<vmem>>, vector<1x128xf32>
    %26 = vector.broadcast %25 : vector<1x128xf32> to vector<8x128xf32>
    %27 = arith.addf %24, %26 : vector<8x128xf32>
    %cst_19 = arith.constant 0.000000e+00 : f32
    %28 = vector.broadcast %cst_19 : f32 to vector<8x128xf32>
    %29 = arith.maximumf %27, %28 : vector<8x128xf32>
    %30 = arith.truncf %29 : vector<8x128xf32> to vector<8x128xbf16>
    %c0_20 = arith.constant 0 : index
    %c0_21 = arith.constant 0 : index
    %31 = vector.load %arg9[%c0_20, %c0_21] : memref<128x256xbf16, #tpu.memory_space<vmem>>, vector<128x256xbf16>
    %cst_22 = arith.constant dense<0.000000e+00> : vector<8x256xf32>
    %32 = tpu.matmul %30, %31, %cst_22 {dimension_numbers = #tpu.dot_dimension_numbers<[1], [0], [0], [1], [0, 0, 1, 1], [], []>} : vector<8x128xbf16>, vector<128x256xbf16>, vector<8x256xf32> -> vector<8x256xf32>
    %c0_23 = arith.constant 0 : index
    %c0_24 = arith.constant 0 : index
    %33 = vector.load %arg10[%c0_23, %c0_24] : memref<1x256xf32, #tpu.memory_space<vmem>>, vector<1x256xf32>
    %34 = vector.broadcast %33 : vector<1x256xf32> to vector<8x256xf32>
    %35 = arith.addf %32, %34 : vector<8x256xf32>
    %36 = vector.extract_strided_slice %35 {offsets = [0, 0], sizes = [8, 128], strides = [1, 1]} : vector<8x256xf32> to vector<8x128xf32>
    %37 = vector.extract_strided_slice %35 {offsets = [0, 128], sizes = [8, 128], strides = [1, 1]} : vector<8x256xf32> to vector<8x128xf32>
    %cst_25 = arith.constant 0.000000e+00 : f32
    %38 = vector.broadcast %cst_25 : f32 to vector<8x128xf32>
    %39 = arith.maximumf %37, %38 : vector<8x128xf32>
    %40 = vector.broadcast %cst_25 : f32 to vector<8x128xf32>
    %41 = arith.subf %37, %40 : vector<8x128xf32>
    %42 = arith.cmpf one, %41, %41 : vector<8x128xf32>
    %43 = vector.broadcast %cst_25 : f32 to vector<8x128xf32>
    %44 = arith.addf %37, %43 : vector<8x128xf32>
    %45 = math.absf %41 : vector<8x128xf32>
    %cst_26 = arith.constant 0.000000e+00 : f32
    %46 = vector.broadcast %cst_26 : f32 to vector<8x128xf32>
    %47 = arith.subf %46, %45 : vector<8x128xf32>
    %48 = math.exp %47 : vector<8x128xf32>
    %49 = math.log1p %48 : vector<8x128xf32>
    %50 = arith.addf %39, %49 : vector<8x128xf32>
    %51 = arith.select %42, %44, %50 : vector<8x128xi1>, vector<8x128xf32>
    %cst_27 = arith.constant 0.00999999977 : f32
    %cst_28 = arith.constant 6.000000e-01 : f32
    %52 = vector.broadcast %cst_27 : f32 to vector<8x128xf32>
    %53 = arith.maximumf %52, %51 : vector<8x128xf32>
    %54 = vector.broadcast %cst_28 : f32 to vector<8x128xf32>
    %55 = arith.minimumf %54, %53 : vector<8x128xf32>
    %56 = arith.mulf %55, %1 : vector<8x128xf32>
    %57 = arith.addf %36, %56 : vector<8x128xf32>
    %58 = arith.truncf %57 : vector<8x128xf32> to vector<8x128xbf16>
    %c0_29 = arith.constant 0 : index
    %c0_30 = arith.constant 0 : index
    %59 = vector.load %arg11[%c0_29, %c0_30] : memref<128x128xbf16, #tpu.memory_space<vmem>>, vector<128x128xbf16>
    %cst_31 = arith.constant dense<0.000000e+00> : vector<8x128xf32>
    %60 = tpu.matmul %58, %59, %cst_31 {dimension_numbers = #tpu.dot_dimension_numbers<[1], [0], [0], [1], [0, 0, 1, 1], [], []>} : vector<8x128xbf16>, vector<128x128xbf16>, vector<8x128xf32> -> vector<8x128xf32>
    %c0_32 = arith.constant 0 : index
    %c0_33 = arith.constant 0 : index
    %61 = vector.load %arg12[%c0_32, %c0_33] : memref<1x128xf32, #tpu.memory_space<vmem>>, vector<1x128xf32>
    %62 = vector.broadcast %61 : vector<1x128xf32> to vector<8x128xf32>
    %63 = arith.addf %60, %62 : vector<8x128xf32>
    %cst_34 = arith.constant 0.000000e+00 : f32
    %64 = vector.broadcast %cst_34 : f32 to vector<8x128xf32>
    %65 = arith.maximumf %63, %64 : vector<8x128xf32>
    %66 = arith.mulf %11, %65 : vector<8x128xf32>
    %67 = arith.truncf %66 : vector<8x128xf32> to vector<8x128xbf16>
    %c0_35 = arith.constant 0 : index
    %c0_36 = arith.constant 0 : index
    %68 = vector.load %arg13[%c0_35, %c0_36] : memref<128x128xbf16, #tpu.memory_space<vmem>>, vector<128x128xbf16>
    %cst_37 = arith.constant dense<0.000000e+00> : vector<8x128xf32>
    %69 = tpu.matmul %67, %68, %cst_37 {dimension_numbers = #tpu.dot_dimension_numbers<[1], [0], [0], [1], [0, 0, 1, 1], [], []>} : vector<8x128xbf16>, vector<128x128xbf16>, vector<8x128xf32> -> vector<8x128xf32>
    %c0_38 = arith.constant 0 : index
    %c0_39 = arith.constant 0 : index
    %70 = vector.load %arg14[%c0_38, %c0_39] : memref<1x128xf32, #tpu.memory_space<vmem>>, vector<1x128xf32>
    %71 = vector.broadcast %70 : vector<1x128xf32> to vector<8x128xf32>
    %72 = arith.addf %69, %71 : vector<8x128xf32>
    %cst_40 = arith.constant 0.000000e+00 : f32
    %73 = vector.broadcast %cst_40 : f32 to vector<8x128xf32>
    %74 = arith.maximumf %72, %73 : vector<8x128xf32>
    %75 = arith.truncf %74 : vector<8x128xf32> to vector<8x128xbf16>
    %c0_41 = arith.constant 0 : index
    %c0_42 = arith.constant 0 : index
    %76 = vector.load %arg15[%c0_41, %c0_42] : memref<128x128xbf16, #tpu.memory_space<vmem>>, vector<128x128xbf16>
    %cst_43 = arith.constant dense<0.000000e+00> : vector<8x128xf32>
    %77 = tpu.matmul %75, %76, %cst_43 {dimension_numbers = #tpu.dot_dimension_numbers<[1], [0], [0], [1], [0, 0, 1, 1], [], []>} : vector<8x128xbf16>, vector<128x128xbf16>, vector<8x128xf32> -> vector<8x128xf32>
    %c0_44 = arith.constant 0 : index
    %c0_45 = arith.constant 0 : index
    %78 = vector.load %arg16[%c0_44, %c0_45] : memref<1x128xf32, #tpu.memory_space<vmem>>, vector<1x128xf32>
    %79 = vector.broadcast %78 : vector<1x128xf32> to vector<8x128xf32>
    %80 = arith.addf %77, %79 : vector<8x128xf32>
    %cst_46 = arith.constant 0.000000e+00 : f32
    %81 = vector.broadcast %cst_46 : f32 to vector<8x128xf32>
    %82 = arith.maximumf %80, %81 : vector<8x128xf32>
    %83 = arith.truncf %82 : vector<8x128xf32> to vector<8x128xbf16>
    %c0_47 = arith.constant 0 : index
    %c0_48 = arith.constant 0 : index
    %84 = vector.load %arg17[%c0_47, %c0_48] : memref<128x256xbf16, #tpu.memory_space<vmem>>, vector<128x256xbf16>
    %cst_49 = arith.constant dense<0.000000e+00> : vector<8x256xf32>
    %85 = tpu.matmul %83, %84, %cst_49 {dimension_numbers = #tpu.dot_dimension_numbers<[1], [0], [0], [1], [0, 0, 1, 1], [], []>} : vector<8x128xbf16>, vector<128x256xbf16>, vector<8x256xf32> -> vector<8x256xf32>
    %c0_50 = arith.constant 0 : index
    %c0_51 = arith.constant 0 : index
    %86 = vector.load %arg18[%c0_50, %c0_51] : memref<1x256xf32, #tpu.memory_space<vmem>>, vector<1x256xf32>
    %87 = vector.broadcast %86 : vector<1x256xf32> to vector<8x256xf32>
    %88 = arith.addf %85, %87 : vector<8x256xf32>
    %89 = vector.extract_strided_slice %88 {offsets = [0, 0], sizes = [8, 128], strides = [1, 1]} : vector<8x256xf32> to vector<8x128xf32>
    %cst_52 = arith.constant 0.000000e+00 : f32
    %90 = vector.broadcast %cst_52 : f32 to vector<8x128xf32>
    %91 = arith.maximumf %89, %90 : vector<8x128xf32>
    %92 = vector.extract_strided_slice %88 {offsets = [0, 128], sizes = [8, 4], strides = [1, 1]} : vector<8x256xf32> to vector<8x4xf32>
    %93 = arith.truncf %91 : vector<8x128xf32> to vector<8x128xbf16>
    %c0_53 = arith.constant 0 : index
    %c0_54 = arith.constant 0 : index
    %94 = vector.load %arg19[%c0_53, %c0_54] : memref<128x128xbf16, #tpu.memory_space<vmem>>, vector<128x128xbf16>
    %cst_55 = arith.constant dense<0.000000e+00> : vector<8x128xf32>
    %95 = tpu.matmul %93, %94, %cst_55 {dimension_numbers = #tpu.dot_dimension_numbers<[1], [0], [0], [1], [0, 0, 1, 1], [], []>} : vector<8x128xbf16>, vector<128x128xbf16>, vector<8x128xf32> -> vector<8x128xf32>
    %c0_56 = arith.constant 0 : index
    %c0_57 = arith.constant 0 : index
    %96 = vector.load %arg20[%c0_56, %c0_57] : memref<1x128xf32, #tpu.memory_space<vmem>>, vector<1x128xf32>
    %97 = vector.broadcast %96 : vector<1x128xf32> to vector<8x128xf32>
    %98 = arith.addf %95, %97 : vector<8x128xf32>
    %99 = vector.extract_strided_slice %98 {offsets = [0, 0], sizes = [8, 8], strides = [1, 1]} : vector<8x128xf32> to vector<8x8xf32>
    %100 = math.tanh %92 : vector<8x4xf32>
    %101 = vector.broadcast %0 : f32 to vector<8x4xf32>
    %102 = arith.mulf %101, %100 : vector<8x4xf32>
    %103 = math.tanh %99 : vector<8x8xf32>
    %104 = vector.extract_strided_slice %36 {offsets = [0, 0], sizes = [8, 6], strides = [1, 1]} : vector<8x128xf32> to vector<8x6xf32>
    %105 = vector.extract_strided_slice %55 {offsets = [0, 0], sizes = [8, 6], strides = [1, 1]} : vector<8x128xf32> to vector<8x6xf32>
    %cst_58 = arith.constant 0.000000e+00 : f32
    %106 = vector.broadcast %cst_58 : f32 to vector<8x104xf32>
    %107 = tpu.concatenate %102, %103, %104, %105, %106 in 1 : vector<8x4xf32>, vector<8x8xf32>, vector<8x6xf32>, vector<8x6xf32>, vector<8x104xf32> -> vector<8x128xf32>
    %c0_59 = arith.constant 0 : index
    %c0_60 = arith.constant 0 : index
    %108 = vector.load %arg21[%c0_59, %c0_60] : memref<8x128xf32, #tpu.memory_space<vmem>>, vector<8x128xf32>
    tpu.vector_store %arg21[%c0_59, %c0_60], %107 {strides = array<i32>} : memref<8x128xf32, #tpu.memory_space<vmem>>, vector<8x128xf32>,
    return
  }
  func.func @transform_0(%arg0: i32) -> (i32, i32) {
    %c0_i32 = arith.constant 0 : i32
    %c0_i32_0 = arith.constant 0 : i32
    %c0_i32_1 = arith.constant 0 : i32
    return %c0_i32, %c0_i32_0 : i32, i32
  }
  func.func @transform_1(%arg0: i32) -> (i32, i32) {
    %c0_i32 = arith.constant 0 : i32
    %c0_i32_0 = arith.constant 0 : i32
    return %arg0, %c0_i32 : i32, i32
  }
  func.func @transform_2(%arg0: i32) -> (i32, i32) {
    %c0_i32 = arith.constant 0 : i32
    %c0_i32_0 = arith.constant 0 : i32
    %c0_i32_1 = arith.constant 0 : i32
    return %c0_i32, %c0_i32_0 : i32, i32
  }
  func.func @transform_3(%arg0: i32) -> (i32, i32) {
    %c0_i32 = arith.constant 0 : i32
    %c0_i32_0 = arith.constant 0 : i32
    %c0_i32_1 = arith.constant 0 : i32
    return %c0_i32, %c0_i32_0 : i32, i32
  }
  func.func @transform_4(%arg0: i32) -> (i32, i32) {
    %c0_i32 = arith.constant 0 : i32
    %c0_i32_0 = arith.constant 0 : i32
    %c0_i32_1 = arith.constant 0 : i32
    return %c0_i32, %c0_i32_0 : i32, i32
  }
  func.func @transform_5(%arg0: i32) -> (i32, i32) {
    %c0_i32 = arith.constant 0 : i32
    %c0_i32_0 = arith.constant 0 : i32
    %c0_i32_1 = arith.constant 0 : i32
    return %c0_i32, %c0_i32_0 : i32, i32
  }
  func.func @transform_6(%arg0: i32) -> (i32, i32) {
    %c0_i32 = arith.constant 0 : i32
    %c0_i32_0 = arith.constant 0 : i32
    %c0_i32_1 = arith.constant 0 : i32
    return %c0_i32, %c0_i32_0 : i32, i32
  }
  func.func @transform_7(%arg0: i32) -> (i32, i32) {
    %c0_i32 = arith.constant 0 : i32
    %c0_i32_0 = arith.constant 0 : i32
    %c0_i32_1 = arith.constant 0 : i32
    return %c0_i32, %c0_i32_0 : i32, i32
  }
  func.func @transform_8(%arg0: i32) -> (i32, i32) {
    %c0_i32 = arith.constant 0 : i32
    %c0_i32_0 = arith.constant 0 : i32
    %c0_i32_1 = arith.constant 0 : i32
    return %c0_i32, %c0_i32_0 : i32, i32
  }
  func.func @transform_9(%arg0: i32) -> (i32, i32) {
    %c0_i32 = arith.constant 0 : i32
    %c0_i32_0 = arith.constant 0 : i32
    %c0_i32_1 = arith.constant 0 : i32
    return %c0_i32, %c0_i32_0 : i32, i32
  }
  func.func @transform_10(%arg0: i32) -> (i32, i32) {
    %c0_i32 = arith.constant 0 : i32
    %c0_i32_0 = arith.constant 0 : i32
    %c0_i32_1 = arith.constant 0 : i32
    return %c0_i32, %c0_i32_0 : i32, i32
  }
  func.func @transform_11(%arg0: i32) -> (i32, i32) {
    %c0_i32 = arith.constant 0 : i32
    %c0_i32_0 = arith.constant 0 : i32
    %c0_i32_1 = arith.constant 0 : i32
    return %c0_i32, %c0_i32_0 : i32, i32
  }
  func.func @transform_12(%arg0: i32) -> (i32, i32) {
    %c0_i32 = arith.constant 0 : i32
    %c0_i32_0 = arith.constant 0 : i32
    %c0_i32_1 = arith.constant 0 : i32
    return %c0_i32, %c0_i32_0 : i32, i32
  }
  func.func @transform_13(%arg0: i32) -> (i32, i32) {
    %c0_i32 = arith.constant 0 : i32
    %c0_i32_0 = arith.constant 0 : i32
    %c0_i32_1 = arith.constant 0 : i32
    return %c0_i32, %c0_i32_0 : i32, i32
  }
  func.func @transform_14(%arg0: i32) -> (i32, i32) {
    %c0_i32 = arith.constant 0 : i32
    %c0_i32_0 = arith.constant 0 : i32
    %c0_i32_1 = arith.constant 0 : i32
    return %c0_i32, %c0_i32_0 : i32, i32
  }
  func.func @transform_15(%arg0: i32) -> (i32, i32) {
    %c0_i32 = arith.constant 0 : i32
    %c0_i32_0 = arith.constant 0 : i32
    %c0_i32_1 = arith.constant 0 : i32
    return %c0_i32, %c0_i32_0 : i32, i32
  }
  func.func @transform_16(%arg0: i32) -> (i32, i32) {
    %c0_i32 = arith.constant 0 : i32
    %c0_i32_0 = arith.constant 0 : i32
    %c0_i32_1 = arith.constant 0 : i32
    return %c0_i32, %c0_i32_0 : i32, i32
  }
  func.func @transform_17(%arg0: i32) -> (i32, i32) {
    %c0_i32 = arith.constant 0 : i32
    %c0_i32_0 = arith.constant 0 : i32
    %c0_i32_1 = arith.constant 0 : i32
    return %c0_i32, %c0_i32_0 : i32, i32
  }
  func.func @transform_18(%arg0: i32) -> (i32, i32) {
    %c0_i32 = arith.constant 0 : i32
    %c0_i32_0 = arith.constant 0 : i32
    %c0_i32_1 = arith.constant 0 : i32
    return %c0_i32, %c0_i32_0 : i32, i32
  }
  func.func @transform_19(%arg0: i32) -> (i32, i32) {
    %c0_i32 = arith.constant 0 : i32
    %c0_i32_0 = arith.constant 0 : i32
    %c0_i32_1 = arith.constant 0 : i32
    return %c0_i32, %c0_i32_0 : i32, i32
  }
  func.func @transform_20(%arg0: i32) -> (i32, i32) {
    %c0_i32 = arith.constant 0 : i32
    %c0_i32_0 = arith.constant 0 : i32
    return %arg0, %c0_i32 : i32, i32
  }
}

</mosaic_0001>

<bundles_post_ra>
// kernel: tpu_custom_call.1
= control target key start
LH: loop header
LB: loop body
LE: loop exit
PB: predicated region body
PF: predicated region fallthrough
CT: control target
= control target key end

     0   :  { %s2402_s0 = inlined_call_operand.<no memory space> [shape: f32[1,1], index: 0, kind: input, shape index: {}]   ;;  %s2403_s1 = inlined_call_operand.hbm [shape: f32[8,128], index: 1, kind: input, shape index: {}]   ;;  %s2404_s2 = inlined_call_operand.hbm [shape: bf16[128,384], index: 2, kind: input, shape index: {}]   ;;  %s2405_s3 = inlined_call_operand.vmem [shape: f32[1,384], index: 3, kind: input, shape index: {}]   ;;  %s2406_s4 = inlined_call_operand.hbm [shape: bf16[128,128], index: 4, kind: input, shape index: {}]   ;;  %s2407_s5 = inlined_call_operand.hbm [shape: f32[1,128], index: 5, kind: input, shape index: {}]   ;;  %s2408_s6 = inlined_call_operand.hbm [shape: bf16[128,128], index: 6, kind: input, shape index: {}]   ;;  %s2409_s7 = inlined_call_operand.hbm [shape: f32[1,128], index: 7, kind: input, shape index: {}]   ;;  %s2410_s8 = inlined_call_operand.hbm [shape: bf16[128,256], index: 8, kind: input, shape index: {}]   ;;  %s2411_s9 = inlined_call_operand.vmem [shape: f32[1,256], index: 9, kind: input, shape index: {}]   ;;  %s2412_s10 = inlined_call_operand.hbm [shape: bf16[128,128], index: 10, kind: input, shape index: {}]   ;;  %s2413_s11 = inlined_call_operand.vmem [shape: f32[1,128], index: 11, kind: input, shape index: {}]   ;;  %s2414_s12 = inlined_call_operand.hbm [shape: bf16[128,128], index: 12, kind: input, shape index: {}]   ;;  %s2415_s13 = inlined_call_operand.vmem [shape: f32[1,128], index: 13, kind: input, shape index: {}]   ;;  %s2416_s14 = inlined_call_operand.hbm [shape: bf16[128,128], index: 14, kind: input, shape index: {}]   ;;  %s2417_s15 = inlined_call_operand.vmem [shape: f32[1,128], index: 15, kind: input, shape index: {}]   ;;  %s2418_s16 = inlined_call_operand.hbm [shape: bf16[128,256], index: 16, kind: input, shape index: {}]   ;;  %s2419_s17 = inlined_call_operand.vmem [shape: f32[1,256], index: 17, kind: input, shape index: {}]   ;;  %s2420_s18 = inlined_call_operand.hbm [shape: bf16[128,128], index: 18, kind: input, shape index: {}]   ;;  %s2421_s19 = inlined_call_operand.vmem [shape: f32[1,128], index: 19, kind: input, shape index: {}]   ;;  %s2422_s20 = inlined_call_operand.hbm [shape: f32[8,128], index: 20, kind: output, shape index: {}]  }
   0x1   :  { %2423 = sst [smem:[#allocation32_spill]] %s2402_s0 }
   0x2   :  { %2424 = sst [smem:[#allocation33_spill]] %s2403_s1 }
   0x3   :  { %2425 = sst [smem:[#allocation34_spill]] %s2404_s2 }
   0x4   :  { %2426 = sst [smem:[#allocation35_spill]] %s2405_s3 }
   0x5   :  { %2427 = sst [smem:[#allocation36_spill]] %s2406_s4 }
   0x6   :  { %26 = vsyncpa [#allocation4], 0 }
   0x7   :  { %27 = vsyncpa [#allocation7], 0 }
   0x8   :  { %28 = vsyncpa [#allocation10], 0 }
   0x9   :  { %29 = vsyncpa [#allocation13], 0 }
   0xa   :  { %30 = vsyncpa [#allocation16], 0 }
   0xb   :  { %31 = vsyncpa [#allocation19], 0 }
   0xc   :  { %32 = vsyncpa [#allocation22], 0  ;;  %s2428_s23 = sld [smem:[#allocation34_spill]] }
  0x12   :  { %s51_s24 = sshll.u32 %s2428_s23, 4  ;;  %s52_s24 = int_to_ptr.hbm [resolvable:$true] %s51_s24 }
  0x13   :  { %33 = vsyncpa [#allocation5], 0  ;;  %s2171_s2 = smov [#allocation6]   ;;  %s80_s27 = sshll.u32 %s2407_s5, 4  ;;  %s81_s27 = int_to_ptr.hbm [resolvable:$true] %s80_s27 }
  0x14   :  { %s53_s25 = sshll.u32 %s2171_s2, 4  ;;  %s2172_s28 = smov 192   ;;  %s54_s25 = int_to_ptr.vmem [resolvable:$true] %s53_s25 }
  0x15   :  { %s2173_s4 = smov 12   ;;  %s2174_s29 = smov [#allocation9]  }
  0x16   :  { %59 = dma.hbm_to_vmem [thread:$0]  %s52_s24, 3072, %s54_s25, [#allocation7], %s2172_s28, %s2172_s28, %s2173_s4  }
  0x17   :  { %s82_s30 = sshll.u32 %s2174_s29, 4  ;;  %s104_s1 = sshll.u32 %s2409_s7, 4  ;;  %s83_s30 = int_to_ptr.vmem [resolvable:$true] %s82_s30  ;;  %s105_s1 = int_to_ptr.hbm [resolvable:$true] %s104_s1 }
  0x18   :  { %85 = dma.hbm_to_vmem [thread:$0]  %s81_s27, 16, %s83_s30, [#allocation10]  }
  0x19   :  { %s2175_s22 = smov [#allocation12]   ;;  %s129_s5 = sshll.u32 %s2412_s10, 4  ;;  %s130_s5 = int_to_ptr.hbm [resolvable:$true] %s129_s5 }
  0x1a   :  { %s106_s23 = sshll.u32 %s2175_s22, 4  ;;  %s2176_s24 = smov [#allocation15]   ;;  %s107_s23 = int_to_ptr.vmem [resolvable:$true] %s106_s23 }
  0x1b   :  { %109 = dma.hbm_to_vmem [thread:$0]  %s105_s1, 16, %s107_s23, [#allocation13]  }
  0x1c   :  { %s131_s25 = sshll.u32 %s2176_s24, 4  ;;  %s159_s29 = sshll.u32 %s2416_s14, 4  ;;  %s132_s25 = int_to_ptr.vmem [resolvable:$true] %s131_s25  ;;  %s160_s29 = int_to_ptr.hbm [resolvable:$true] %s159_s29 }
  0x1d   :  { %s2177_s7 = smov 64   ;;  %s2178_s0 = smov 4  }
  0x1e   :  { %137 = dma.hbm_to_vmem [thread:$0]  %s130_s5, 1024, %s132_s25, [#allocation16], %s2177_s7, %s2177_s7, %s2178_s0  }
  0x1f   :  { %s2429_s21 = sld [smem:[#allocation33_spill]]  ;;  %s2179_s1 = smov [#allocation18]  }
  0x20   :  { %s161_s22 = sshll.u32 %s2179_s1, 4  ;;  %s2180_s14 = smov [#allocation3]   ;;  %s162_s22 = int_to_ptr.vmem [resolvable:$true] %s161_s22 }
  0x21   :  { %167 = dma.hbm_to_vmem [thread:$0]  %s160_s29, 1024, %s162_s22, [#allocation19], %s2177_s7, %s2177_s7, %s2178_s0  }
  0x22   :  { %s43_s23 = sshll.u32 %s2180_s14, 4  ;;  %s2430_s24 = sld [smem:[#allocation36_spill]]  ;;  %s44_s23 = int_to_ptr.vmem [resolvable:$true] %s43_s23 }
  0x23   :  { %s90_s28 = sshll.u32 %s2408_s6, 4  ;;  %s2181_s27 = smov [#allocation8]   ;;  %s91_s28 = int_to_ptr.hbm [resolvable:$true] %s90_s28 }
  0x24   :  { %s68_s30 = sshll.u32 %s2181_s27, 4  ;;  %s2182_s29 = smov [#allocation11]   ;;  %s69_s30 = int_to_ptr.vmem [resolvable:$true] %s68_s30 }
  0x25   :  { %s41_s10 = sshll.u32 %s2429_s21, 4  ;;  %s92_s21 = sshll.u32 %s2182_s29, 4  ;;  %s42_s10 = int_to_ptr.hbm [resolvable:$true] %s41_s10  ;;  %s93_s21 = int_to_ptr.vmem [resolvable:$true] %s92_s21 }
  0x26   :  { %46 = dma.hbm_to_vmem [thread:$0]  %s42_s10, 128, %s44_s23, [#allocation4]  }
  0x27   :  { %s114_s14 = sshll.u32 %s2410_s8, 4  ;;  %s2183_s6 = smov [#allocation14]   ;;  %s115_s14 = int_to_ptr.hbm [resolvable:$true] %s114_s14 }
  0x28   :  { %s66_s26 = sshll.u32 %s2430_s24, 4  ;;  %s116_s10 = sshll.u32 %s2183_s6, 4  ;;  %s67_s26 = int_to_ptr.hbm [resolvable:$true] %s66_s26  ;;  %s117_s10 = int_to_ptr.vmem [resolvable:$true] %s116_s10 }
  0x29   :  { %74 = dma.hbm_to_vmem [thread:$0]  %s67_s26, 1024, %s69_s30, [#allocation7], %s2177_s7, %s2177_s7, %s2178_s0  }
  0x2a   :  { %98 = dma.hbm_to_vmem [thread:$0]  %s91_s28, 1024, %s93_s21, [#allocation10], %s2177_s7, %s2177_s7, %s2178_s0  }
  0x2b   :  { %s144_s3 = sshll.u32 %s2414_s12, 4  ;;  %s2184_s24 = smov 128   ;;  %s145_s3 = int_to_ptr.hbm [resolvable:$true] %s144_s3 }
  0x2c   :  { %s2185_s26 = smov 8   ;;  %s2186_s5 = smov [#allocation17]  }
  0x2d   :  { %122 = dma.hbm_to_vmem [thread:$0]  %s115_s14, 2048, %s117_s10, [#allocation13], %s2184_s24, %s2184_s24, %s2185_s26  }
  0x2e   :  { %s146_s25 = sshll.u32 %s2186_s5, 4  ;;  %s174_s30 = sshll.u32 %s2418_s16, 4  ;;  %s147_s25 = int_to_ptr.vmem [resolvable:$true] %s146_s25  ;;  %s175_s30 = int_to_ptr.hbm [resolvable:$true] %s174_s30 }
  0x2f   :  { %152 = dma.hbm_to_vmem [thread:$0]  %s145_s3, 1024, %s147_s25, [#allocation16], %s2177_s7, %s2177_s7, %s2178_s0  }
  0x30   :  { %s189_s12 = sshll.u32 %s2420_s18, 4  ;;  %s2187_s21 = smov [#allocation20]   ;;  %s190_s12 = int_to_ptr.hbm [resolvable:$true] %s189_s12 }
  0x31   :  { %s176_s1 = sshll.u32 %s2187_s21, 4  ;;  %s2188_s22 = smov [#allocation21]   ;;  %s177_s1 = int_to_ptr.vmem [resolvable:$true] %s176_s1 }
  0x32   :  { %182 = dma.hbm_to_vmem [thread:$0]  %s175_s30, 2048, %s177_s1, [#allocation19], %s2184_s24, %s2184_s24, %s2185_s26  }
  0x33   :  { %s191_s14 = sshll.u32 %s2188_s22, 4  ;;  %s192_s14 = int_to_ptr.vmem [resolvable:$true] %s191_s14 }
  0x34   :  { %197 = dma.hbm_to_vmem [thread:$0]  %s190_s12, 1024, %s192_s14, [#allocation22], %s2177_s7, %s2177_s7, %s2178_s0  }
  0x35   :  { %2155 = dma.done.wait [#allocation4], 128  }
  0x36   :  { %2156 = vsyncadd [#allocation4], 4294967168 }
  0x37   :  { %2157 = dma.done.wait [#allocation7], 4096  }
  0x38   :  { %2158 = vsyncadd [#allocation7], 4294963200 }
  0x39   :  { %2159 = dma.done.wait [#allocation10], 1040  }
  0x3a   :  { %2160 = vsyncadd [#allocation10], 4294966256 }
  0x3b   :  { %2161 = dma.done.wait [#allocation13], 2064  }
  0x3c   :  { %2162 = vsyncadd [#allocation13], 4294965232 }
  0x3d   :  { %2163 = dma.done.wait [#allocation16], 2048  }
  0x3e   :  { %2164 = vsyncadd [#allocation16], 4294965248 }
  0x3f   :  { %2165 = dma.done.wait [#allocation19], 3072  }
  0x40   :  { %2166 = vsyncadd [#allocation19], 4294964224 }
  0x41   :  { %2167 = dma.done.wait [#allocation22], 1024  }
  0x42   :  { %2168 = vsyncadd [#allocation22], 4294966272  ;;  %v1375_v0 = vld [vmem:[#allocation6 + $0xa8] sm:$0xf]  ;;  %v1727_v1 = vld [vmem:[#allocation6 + $0xb0] sm:$0xf0] }
  0x43   :  { %v1383_v2 = vld [vmem:[#allocation6 + $0xb0] sm:$0xf]  ;;  %v1376_v3 = vor.u32 %v1727_v1, %v1375_v0  ;;  %v1728_v4 = vld [vmem:[#allocation6 + $0xb8] sm:$0xf0]  ;;  %v1371_v8 = vld [vmem:[#allocation6 + $0x98] sm:$0xf] }
  0x44   :  { %v1363_v5 = vld [vmem:[#allocation6 + $0x90] sm:$0xf]  ;;  %v1724_v6 = vld [vmem:[#allocation6 + $0x98] sm:$0xf0]  ;;  %v1384_v7 = vor.u32 %v1728_v4, %v1383_v2  ;;  %v1725_v9 = vld [vmem:[#allocation6 + $0xa0] sm:$0xf0] }
  0x45   :  { %419 = vmatpush.bf16.msra.mxu0 %v1376_v3  ;;  %v1364_v10 = vor.u32 %v1724_v6, %v1363_v5  ;;  %v1372_v11 = vor.u32 %v1725_v9, %v1371_v8  ;;  %v1351_v12 = vld [vmem:[#allocation6 + $0x78] sm:$0xf]  ;;  %v1721_v13 = vld [vmem:[#allocation6 + $0x80] sm:$0xf0]  ;;  %v1359_v14 = vld [vmem:[#allocation6 + $0x80] sm:$0xf] }
  0x46   :  { %445 = vmatpush.bf16.msra.mxu2 %v1384_v7  ;;  %v1722_v15 = vld [vmem:[#allocation6 + $0x88] sm:$0xf0]  ;;  %v1352_v16 = vor.u32 %v1721_v13, %v1351_v12  ;;  %v1339_v18 = vld [vmem:[#allocation6 + $0x60] sm:$0xf]  ;;  %v1347_v20 = vld [vmem:[#allocation6 + $0x68] sm:$0xf] }
  0x47   :  { %v1360_v17 = vor.u32 %v1722_v15, %v1359_v14  ;;  %v1718_v19 = vld [vmem:[#allocation6 + $0x68] sm:$0xf0]  ;;  %v1719_v21 = vld [vmem:[#allocation6 + $0x70] sm:$0xf0]  ;;  %v1327_v23 = vld [vmem:[#allocation6 + $0x48] sm:$0xf] }
  0x48   :  { %v1340_v22 = vor.u32 %v1718_v19, %v1339_v18  ;;  %v1715_v24 = vld [vmem:[#allocation6 + $0x50] sm:$0xf0]  ;;  %v1736_v25 = vld [vmem:[#allocation8 + $0x38] sm:$0xff]  ;;  %v1348_v26 = vor.u32 %v1719_v21, %v1347_v20  ;;  %v1335_v27 = vld [vmem:[#allocation6 + $0x50] sm:$0xf]  ;;  %s2431_s7 = sld [smem:[#allocation35_spill]] }
  0x49   :  { %420 = vmatpush.bf16.msra.mxu0 %v1364_v10  ;;  %v1716_v28 = vld [vmem:[#allocation6 + $0x58] sm:$0xf0]  ;;  %531 = vmatpush.bf16.msra.mxu3 %v1736_v25  ;;  %v1735_v29 = vld [vmem:[#allocation8 + $0x30] sm:$0xff]  ;;  %v1328_v30 = vor.u32 %v1715_v24, %v1327_v23  ;;  %v1323_v34 = vld [vmem:[#allocation6 + $0x38] sm:$0xf]  ;;  %s2432_s27 = sld [smem:[#allocation32_spill]] }
  0x4a   :  { %446 = vmatpush.bf16.msra.mxu2 %v1372_v11  ;;  %v1336_v31 = vor.u32 %v1716_v28, %v1335_v27  ;;  %v1315_v32 = vld [vmem:[#allocation6 + $0x30] sm:$0xf]  ;;  %v1712_v33 = vld [vmem:[#allocation6 + $0x38] sm:$0xf0]  ;;  %v1713_v35 = vld [vmem:[#allocation6 + $0x40] sm:$0xf0] }
  0x4b   :  { %v1734_v36 = vld [vmem:[#allocation8 + $0x28] sm:$0xff]  ;;  %v1316_v37 = vor.u32 %v1712_v33, %v1315_v32  ;;  %v1324_v38 = vor.u32 %v1713_v35, %v1323_v34  ;;  %v1303_v39 = vld [vmem:[#allocation6 + $0x18] sm:$0xf]  ;;  %v1709_v40 = vld [vmem:[#allocation6 + $0x20] sm:$0xf0]  ;;  %vm1257_vm2 = vcmask 31744  }
  0x4c   :  { %v1311_v41 = vld [vmem:[#allocation6 + $0x20] sm:$0xf]  ;;  %v1710_v42 = vld [vmem:[#allocation6 + $0x28] sm:$0xf0]  ;;  %v1304_v44 = vor.u32 %v1709_v40, %v1303_v39  ;;  %v1299_v48 = vld [vmem:[#allocation6 + $0x8] sm:$0xf] }
  0x4d   :  { %421 = vmatpush.bf16.msra.mxu0 %v1352_v16  ;;  %532 = vmatpush.bf16.msra.mxu3 %v1735_v29  ;;  %v1733_v43 = vld [vmem:[#allocation8 + $0x20] sm:$0xff]  ;;  %v1312_v45 = vor.u32 %v1710_v42, %v1311_v41  ;;  %v1706_v47 = vld [vmem:[#allocation6 + $0x8] sm:$0xf0]  ;;  %v1707_v49 = vld [vmem:[#allocation6 + $0x10] sm:$0xf0]  ;;  %vm1259_vm3 = vcmask 97280  }
  0x4e   :  { %447 = vmatpush.bf16.msra.mxu2 %v1360_v17  ;;  %v1291_v46 = vld [vmem:[#allocation6] sm:$0xf]  ;;  %v2351_v51 = vld [vmem:[#allocation3] sm:$0xff]  ;;  %v1300_v52 = vor.u32 %v1707_v49, %v1299_v48  ;;  %v1731_v55 = vld [vmem:[#allocation8 + $0x10] sm:$0xff]  ;;  %vm1261_vm4 = vcmask 146432   ;;  %s1273_s29 = sshll.u32 %s2422_s20, 4  ;;  %s1274_s29 = int_to_ptr.hbm [resolvable:$true] %s1273_s29 }
  0x4f   :  { %v1292_v50 = vor.u32 %v1706_v47, %v1291_v46  ;;  %v2355_v53 = vpack.c.bf16 %v2351_v51, %v2351_v51  ;;  %v1732_v54 = vld [vmem:[#allocation8 + $0x18] sm:$0xff]  ;;  %v1730_v56 = vld [vmem:[#allocation8 + $0x8] sm:$0xff]  ;;  %v1729_v57 = vld [vmem:[#allocation8] sm:$0xff]  ;;  %vm1263_vm5 = vcmask 195584  }
  0x50   :  { %v1744_v58 = vld [vmem:[#allocation11 + $0x38] sm:$0xff]  ;;  %v1743_v59 = vld [vmem:[#allocation11 + $0x30] sm:$0xff]  ;;  %v1742_v60 = vld [vmem:[#allocation11 + $0x28] sm:$0xff] }
  0x51   :  { %422 = vmatpush.bf16.msra.mxu0 %v1340_v22  ;;  %533 = vmatpush.bf16.msra.mxu3 %v1734_v36  ;;  %v1741_v61 = vld [vmem:[#allocation11 + $0x20] sm:$0xff]  ;;  %v2362_v62 = vld [vmem:[%s2431_s7] sm:$0x7]  ;;  %v1738_v13 = vld [vmem:[#allocation11 + $0x8] sm:$0xff] }
  0x52   :  { %448 = vmatpush.bf16.msra.mxu2 %v1348_v26  ;;  %v1740_v63 = vld [vmem:[#allocation11 + $0x18] sm:$0xff]  ;;  %v285_v0 = vperm.slane %v2362_v62, 0  ;;  %v1739_v2 = vld [vmem:[#allocation11 + $0x10] sm:$0xff]  ;;  %v287_v4 = vperm.slane %v2362_v62, 2  ;;  %v1737_v14 = vld [vmem:[#allocation11] sm:$0xff] }
  0x53   :  { %v1726_v15 = vld [vmem:[#allocation6 + $0xac] sm:$0xf]  ;;  %v1377_v16 = vld [vmem:[#allocation6 + $0xb4] sm:$0xf0]  ;;  %v1723_v17 = vld [vmem:[#allocation6 + $0x94] sm:$0xf] }
  0x54   :  { %v1380_v18 = vor.u32 %v1726_v15, %v1377_v16  ;;  %v1365_v19 = vld [vmem:[#allocation6 + $0x9c] sm:$0xf0]  ;;  %v1720_v21 = vld [vmem:[#allocation6 + $0x7c] sm:$0xf]  ;;  %v1353_v22 = vld [vmem:[#allocation6 + $0x84] sm:$0xf0] }
  0x55   :  { %423 = vmatpush.bf16.msra.mxu0 %v1328_v30  ;;  %534 = vmatpush.bf16.msra.mxu3 %v1733_v43  ;;  %v1368_v20 = vor.u32 %v1723_v17, %v1365_v19  ;;  %v1759_v23 = vld [vmem:[#allocation14 + $0x74] sm:$0xf]  ;;  %v1509_v24 = vld [vmem:[#allocation14 + $0x78] sm:$0xf0]  ;;  %v1356_v25 = vor.u32 %v1720_v21, %v1353_v22  ;;  %v1757_v27 = vld [vmem:[#allocation14 + $0x64] sm:$0xf] }
  0x56   :  { %449 = vmatpush.bf16.msra.mxu2 %v1336_v31  ;;  %432 = vmatpush.bf16.msra.mxu1 %v1380_v18  ;;  %v1512_v26 = vor.u32 %v1759_v23, %v1509_v24  ;;  %v1501_v28 = vld [vmem:[#allocation14 + $0x68] sm:$0xf0]  ;;  %v1717_v29 = vld [vmem:[#allocation6 + $0x64] sm:$0xf]  ;;  %v1755_v32 = vld [vmem:[#allocation14 + $0x54] sm:$0xf] }
  0x57   :  { %v1341_v30 = vld [vmem:[#allocation6 + $0x6c] sm:$0xf0]  ;;  %v1504_v31 = vor.u32 %v1757_v27, %v1501_v28  ;;  %v1493_v33 = vld [vmem:[#allocation14 + $0x58] sm:$0xf0]  ;;  %v1714_v35 = vld [vmem:[#allocation6 + $0x4c] sm:$0xf] }
  0x58   :  { %v1344_v34 = vor.u32 %v1717_v29, %v1341_v30  ;;  %v1329_v36 = vld [vmem:[#allocation6 + $0x54] sm:$0xf0]  ;;  %v1485_v39 = vld [vmem:[#allocation14 + $0x48] sm:$0xf0]  ;;  %v1711_v41 = vld [vmem:[#allocation6 + $0x34] sm:$0xf] }
  0x59   :  { %424 = vmatpush.bf16.msra.mxu0 %v1316_v37  ;;  %535 = vmatpush.bf16.msra.mxu3 %v1732_v54  ;;  %v1496_v37 = vor.u32 %v1755_v32, %v1493_v33  ;;  %v1332_v40 = vor.u32 %v1714_v35, %v1329_v36  ;;  %v1317_v42 = vld [vmem:[#allocation6 + $0x3c] sm:$0xf0]  ;;  %v1708_v47 = vld [vmem:[#allocation6 + $0x1c] sm:$0xf]  ;;  %v1305_v48 = vld [vmem:[#allocation6 + $0x24] sm:$0xf0] }
  0x5a   :  { %450 = vmatpush.bf16.msra.mxu2 %v1324_v38  ;;  %433 = vmatpush.bf16.msra.mxu1 %v1368_v20  ;;  %v1753_v38 = vld [vmem:[#allocation14 + $0x44] sm:$0xf]  ;;  %v1320_v46 = vor.u32 %v1711_v41, %v1317_v42  ;;  %v1829_v49 = vld [vmem:[#allocation9] ss:$0 sm:$0xff]  ;;  %v1469_v54 = vld [vmem:[#allocation14 + $0x28] sm:$0xf0] }
  0x5b   :  { %v1488_v43 = vor.u32 %v1753_v38, %v1485_v39  ;;  %v1752_v15 = vld [vmem:[#allocation14 + $0x34] sm:$0xf0]  ;;  %v1467_v17 = vld [vmem:[#allocation14 + $0x20] sm:$0xf]  ;;  %v1750_v18 = vld [vmem:[#allocation14 + $0x24] sm:$0xf0] }
  0x5c   :  { %v1468_v19 = vor.u32 %v1750_v18, %v1467_v17  ;;  %v1459_v20 = vld [vmem:[#allocation14 + $0x10] sm:$0xf]  ;;  %v1748_v21 = vld [vmem:[#allocation14 + $0x14] sm:$0xf0]  ;;  %v1747_v22 = vld [vmem:[#allocation14 + $0x14] sm:$0xf] }
  0x5d   :  { %425 = vmatpush.bf16.msra.mxu0 %v1304_v44  ;;  %536 = vmatpush.bf16.msra.mxu3 %v1731_v55  ;;  %v1751_v44 = vld [vmem:[#allocation14 + $0x34] sm:$0xf]  ;;  %v1308_v55 = vor.u32 %v1708_v47, %v1305_v48  ;;  %v1460_v23 = vor.u32 %v1748_v21, %v1459_v20  ;;  %v1745_v27 = vld [vmem:[#allocation14 + $0x4] sm:$0xf]  ;;  %v1453_v29 = vld [vmem:[#allocation14 + $0x8] sm:$0xf0] }
  0x5e   :  { %451 = vmatpush.bf16.msra.mxu2 %v1312_v45  ;;  %434 = vmatpush.bf16.msra.mxu1 %v1356_v25  ;;  %v1477_v45 = vld [vmem:[#allocation14 + $0x38] sm:$0xf0]  ;;  %v1451_v25 = vld [vmem:[#allocation14] sm:$0xf]  ;;  %v1456_v30 = vor.u32 %v1745_v27, %v1453_v29  ;;  %v1766_v41 = vld [vmem:[#allocation15 + $0x28] sm:$0xff] }
  0x5f   :  { %v1768_v39 = vld [vmem:[#allocation15 + $0x38] sm:$0xff]  ;;  %v1765_v42 = vld [vmem:[#allocation15 + $0x20] sm:$0xff]  ;;  %v1762_v48 = vld [vmem:[#allocation15 + $0x8] sm:$0xff] }
  0x60   :  { %v1774_v17 = vld [vmem:[#allocation17 + $0x28] sm:$0xff]  ;;  %v1773_v18 = vld [vmem:[#allocation17 + $0x20] sm:$0xff]  ;;  %v1771_v20 = vld [vmem:[#allocation17 + $0x10] sm:$0xff] }
  0x61   :  { %426 = vmatpush.bf16.msra.mxu0 %v1292_v50  ;;  %537 = vmatpush.bf16.msra.mxu3 %v1730_v56  ;;  %v1480_v50 = vor.u32 %v1751_v44, %v1477_v45  ;;  %v1763_v45 = vld [vmem:[#allocation15 + $0x10] sm:$0xff]  ;;  %v1770_v21 = vld [vmem:[#allocation17 + $0x8] sm:$0xff] }
  0x62   :  { %452 = vmatpush.bf16.msra.mxu2 %v1300_v52  ;;  %435 = vmatpush.bf16.msra.mxu1 %v1344_v34  ;;  %v1749_v52 = vld [vmem:[#allocation14 + $0x24] sm:$0xf]  ;;  %v1779_v27 = vld [vmem:[#allocation18 + $0x10] sm:$0xff] }
  0x64   :  { %427 = vmatmul.bf16.vlgmr.msra.gmra.mxu0 %v2355_v53 }
  0x65   :  { %453 = vmatmul.bf16.vlgmr.msra.gmra.mxu2 %v2355_v53  ;;  %538 = vmatpush.bf16.msra.mxu3 %v1729_v57  ;;  %v1705_v57 = vld [vmem:[#allocation6 + $0x4] sm:$0xf] }
  0x66   :  { %614 = vmatpush.bf16.msrb.mxu0 %v1744_v58  ;;  %744 = vmatpush.bf16.msrb.mxu2 %v1512_v26  ;;  %v1293_v58 = vld [vmem:[#allocation6 + $0xc] sm:$0xf0]  ;;  %v1746_v26 = vld [vmem:[#allocation14 + $0x4] sm:$0xf0] }
  0x67   :  { %436 = vmatpush.bf16.msra.mxu1 %v1332_v40  ;;  %v1452_v28 = vor.u32 %v1746_v26, %v1451_v25  ;;  %v1767_v40 = vld [vmem:[#allocation15 + $0x30] sm:$0xff]  ;;  %v1780_v25 = vld [vmem:[#allocation18 + $0x18] sm:$0xff]  ;;  %v286_v26 = vperm.slane %v2362_v62, 1  ;;  %v1777_v62 = vld [vmem:[#allocation18] sm:$0xff] }
  0x69   :  { %848 = vmatpush.bf16.msrb.mxu3 %v1768_v39  ;;  %v1667_v39 = vld [vmem:[#allocation20 + $0x70] sm:$0xf] }
  0x6a   :  { %615 = vmatpush.bf16.msrb.mxu0 %v1743_v59  ;;  %745 = vmatpush.bf16.msrb.mxu2 %v1504_v31  ;;  %v1830_v31 = vld [vmem:[#allocation12] ss:$0 sm:$0xff] }
  0x6b   :  { %437 = vmatpush.bf16.msra.mxu1 %v1320_v46  ;;  %v645_v46 = vld [vmem:[%s2411_s9] sm:$0x3]  ;;  %s2189_s9 = smov 18  }
  0x6c   :  { %v648_v47 = vperm.slane %v645_v46, 1 }
  0x6d   :  { %849 = vmatpush.bf16.msrb.mxu3 %v1767_v40  ;;  %v1800_v40 = vld [vmem:[#allocation20 + $0x74] sm:$0xf0] }
  0x6e   :  { %616 = vmatpush.bf16.msrb.mxu0 %v1742_v60  ;;  %746 = vmatpush.bf16.msrb.mxu2 %v1496_v37  ;;  %v1507_v60 = vld [vmem:[#allocation14 + $0x70] sm:$0xf] }
  0x6f   :  { %438 = vmatpush.bf16.msra.mxu1 %v1308_v55  ;;  %v1761_v55 = vld [vmem:[#allocation15] sm:$0xff] }
  0x71   :  { %850 = vmatpush.bf16.msrb.mxu3 %v1766_v41  ;;  %v1799_v41 = vld [vmem:[#allocation20 + $0x74] sm:$0xf] }
  0x72   :  { %617 = vmatpush.bf16.msrb.mxu0 %v1741_v61  ;;  %747 = vmatpush.bf16.msrb.mxu2 %v1488_v43  ;;  %v1760_v61 = vld [vmem:[#allocation14 + $0x74] sm:$0xf0] }
  0x73   :  { %v1764_v43 = vld [vmem:[#allocation15 + $0x18] sm:$0xff] }
  0x75   :  { %851 = vmatpush.bf16.msrb.mxu3 %v1765_v42  ;;  %v1668_v42 = vor.u32 %v1800_v40, %v1667_v39 }
  0x76   :  { %618 = vmatpush.bf16.msrb.mxu0 %v1740_v63  ;;  %748 = vmatpush.bf16.msrb.mxu2 %v1480_v50  ;;  %v1472_v63 = vor.u32 %v1749_v52, %v1469_v54 }
  0x79   :  { %852 = vmatpush.bf16.msrb.mxu3 %v1764_v43  ;;  %v1669_v43 = vld [vmem:[#allocation20 + $0x78] sm:$0xf0] }
  0x7a   :  { %619 = vmatpush.bf16.msrb.mxu0 %v1739_v2  ;;  %v1508_v2 = vor.u32 %v1760_v61, %v1507_v60  ;;  %749 = vmatpush.bf16.msrb.mxu2 %v1472_v63 }
  0x7d   :  { %853 = vmatpush.bf16.msrb.mxu3 %v1763_v45  ;;  %v1672_v45 = vor.u32 %v1799_v41, %v1669_v43  ;;  %v1801_v43 = vld [vmem:[#allocation21] sm:$0xff] }
  0x7e   :  { %620 = vmatpush.bf16.msrb.mxu0 %v1738_v13 }
  0x81   :  { %854 = vmatpush.bf16.msrb.mxu3 %v1762_v48 }
  0x82   :  { %621 = vmatpush.bf16.msrb.mxu0 %v1737_v14  ;;  %v1475_v14 = vld [vmem:[#allocation14 + $0x30] sm:$0xf] }
  0x83   :  { %v1476_v16 = vor.u32 %v1752_v15, %v1475_v14  ;;  %v1776_v15 = vld [vmem:[#allocation17 + $0x38] sm:$0xff] }
  0x85   :  { %855 = vmatpush.bf16.msrb.mxu3 %v1761_v55  ;;  %v1653_v55 = vld [vmem:[#allocation20 + $0x58] sm:$0xf0] }
  0x86   :  { %932 = vmatpush.bf16.msra.mxu0 %v1776_v15 }
  0xe1   :  { %v428_v1 = vpop.f32.mrf.mxu0 }
  0xe2   :  { %v429_v3 = vadd.f32 %v428_v1, %v285_v0  ;;  %v1296_v1 = vor.u32 %v1705_v57, %v1293_v58 }
  0xe4   :  { %v458_v6 = vmax.f32 %v429_v3, 0.0  ;;  %439 = vmatpush.bf16.msra.mxu1 %v1296_v1 }
  0xe7   :  { %440 = vmatmul.bf16.vlgmr.msra.gmra.mxu1 %v2355_v53  ;;  %v1461_v53 = vld [vmem:[#allocation14 + $0x18] sm:$0xf0] }
  0xe8   :  { %v454_v5 = vpop.f32.mrf.mxu2  ;;  %731 = vmatpush.bf16.msrb.mxu1 %v1508_v2  ;;  %v1464_v24 = vor.u32 %v1747_v22, %v1461_v53  ;;  %v1769_v22 = vld [vmem:[#allocation17] sm:$0xff]  ;;  %v1782_v53 = vld [vmem:[#allocation18 + $0x28] sm:$0xff] }
  0xe9   :  { %v455_v7 = vadd.f32 %v454_v5, %v287_v4  ;;  %v430_v8 = vpop.f32.mrf.mxu0  ;;  %v1499_v4 = vld [vmem:[#allocation14 + $0x60] sm:$0xf]  ;;  %v1758_v5 = vld [vmem:[#allocation14 + $0x64] sm:$0xf0] }
  0xea   :  { %v1491_v8 = vld [vmem:[#allocation14 + $0x50] sm:$0xf]  ;;  %750 = vmatpush.bf16.msrb.mxu2 %v1464_v24  ;;  %v1781_v24 = vld [vmem:[#allocation18 + $0x20] sm:$0xff] }
  0xeb   :  { %v460_v9 = vmax.f32 %v455_v7, 0.0  ;;  %v1500_v7 = vor.u32 %v1758_v5, %v1499_v4 }
  0xed   :  { %v461_v10 = vmul.f32 %v460_v9, %v458_v6  ;;  %v1756_v9 = vld [vmem:[#allocation14 + $0x54] sm:$0xf0]  ;;  %732 = vmatpush.bf16.msrb.mxu1 %v1500_v7 }
  0xee   :  { %751 = vmatpush.bf16.msrb.mxu2 %v1456_v30 }
  0xef   :  { %v462_v11 = vpack.c.bf16 %v461_v10, %v461_v10  ;;  %v1492_v10 = vor.u32 %v1756_v9, %v1491_v8  ;;  %v647_v8 = vperm.slane %v645_v46, 0  ;;  %v1797_v46 = vld [vmem:[#allocation20 + $0x64] sm:$0xf] }
  0xf0   :  { %v456_v12 = vpop.f32.mrf.mxu2 }
  0xf1   :  { %539 = vmatmul.bf16.vlgmr.msra.gmra.mxu3 %v462_v11  ;;  %v1483_v11 = vld [vmem:[#allocation14 + $0x40] sm:$0xf]  ;;  %v1754_v12 = vld [vmem:[#allocation14 + $0x44] sm:$0xf0]  ;;  %733 = vmatpush.bf16.msrb.mxu1 %v1492_v10 }
  0xf2   :  { %v1484_v13 = vor.u32 %v1754_v12, %v1483_v11  ;;  %1132 = vmatpush.bf16.msra.mxu2 %v1668_v42  ;;  %1145 = vmatpush.bf16.msra.mxu3 %v1672_v45  ;;  %v1802_v42 = vld [vmem:[#allocation21 + $0x8] sm:$0xff] }
  0xf5   :  { %734 = vmatpush.bf16.msrb.mxu1 %v1484_v13 }
  0xf9   :  { %735 = vmatpush.bf16.msrb.mxu1 %v1476_v16  ;;  %v1775_v16 = vld [vmem:[#allocation17 + $0x30] sm:$0xff] }
  0xfa   :  { %933 = vmatpush.bf16.msra.mxu0 %v1775_v16 }
  0xfd   :  { %736 = vmatpush.bf16.msrb.mxu1 %v1468_v19  ;;  %v1772_v19 = vld [vmem:[#allocation17 + $0x18] sm:$0xff] }
  0xfe   :  { %934 = vmatpush.bf16.msra.mxu0 %v1774_v17 }
 0x101   :  { %737 = vmatpush.bf16.msrb.mxu1 %v1460_v23  ;;  %v1783_v23 = vld [vmem:[#allocation18 + $0x30] sm:$0xff] }
 0x102   :  { %935 = vmatpush.bf16.msra.mxu0 %v1773_v18 }
 0x105   :  { %738 = vmatpush.bf16.msrb.mxu1 %v1452_v28  ;;  %v1831_v28 = vld [vmem:[%s2413_s11] ss:$0 sm:$0xff] }
 0x106   :  { %936 = vmatpush.bf16.msra.mxu0 %v1772_v19 }
 0x10a   :  { %937 = vmatpush.bf16.msra.mxu0 %v1771_v20  ;;  %v1619_v20 = vld [vmem:[#allocation20 + $0x10] sm:$0xf] }
 0x10e   :  { %938 = vmatpush.bf16.msra.mxu0 %v1770_v21  ;;  %v1788_v21 = vld [vmem:[#allocation20 + $0x14] sm:$0xf0] }
 0x112   :  { %939 = vmatpush.bf16.msra.mxu0 %v1769_v22  ;;  %v1787_v22 = vld [vmem:[#allocation20 + $0x14] sm:$0xf] }
 0x164   :  { %v2367_v35 = vpop.f32.mrf.mxu1 }
 0x165   :  { %v442_v29 = vadd.f32 %v2367_v35, %v286_v26  ;;  %v1798_v35 = vld [vmem:[#allocation20 + $0x64] sm:$0xf0]  ;;  %v1785_v26 = vld [vmem:[#allocation20 + $0x4] sm:$0xf] }
 0x16c   :  { %v443_v38 = vpop.f32.mrf.mxu1 }
 0x16d   :  { %v1778_v38 = vld [vmem:[#allocation18 + $0x8] sm:$0xff] }
 0x174   :  { %v540_v56 = vpop.f32.mrf.mxu3 }
 0x175   :  { %v541_v59 = vadd.f32 %v1829_v49, %v540_v56 }
 0x177   :  { %v544_v0 = vmax.f32 %v541_v59, 0.0 }
 0x179   :  { %v545_v3 = vpack.c.bf16 %v544_v0, %v544_v0 }
 0x17b   :  { %622 = vmatmul.bf16.vlgmr.msrb.gmra.mxu0 %v545_v3 }
 0x17c   :  { %v542_v6 = vpop.f32.mrf.mxu3 }
 0x1f8   :  { %v623_v32 = vpop.f32.mrf.mxu0 }
 0x1f9   :  { %v624_v33 = vadd.f32 %v1830_v31, %v623_v32  ;;  %v459_v32 = vmax.f32 %v442_v29, 0.0 }
 0x1fb   :  { %v627_v34 = vmax.f32 %v624_v33, 0.0 }
 0x1fd   :  { %v628_v36 = vpack.c.bf16 %v627_v34, %v627_v34 }
 0x1ff   :  { %739 = vmatmul.bf16.vlgmr.msrb.gmra.mxu1 %v628_v36  ;;  %752 = vmatmul.bf16.vlgmr.msrb.gmra.mxu2 %v628_v36 }
 0x200   :  { %v625_v37 = vpop.f32.mrf.mxu0 }
 0x27c   :  { %v740_v44 = vpop.f32.mrf.mxu1 }
 0x27d   :  { %v2372_v11 = vadd.f32 %v740_v44, %v647_v8  ;;  %v1659_v44 = vld [vmem:[#allocation20 + $0x60] sm:$0xf]  ;;  %v1790_v8 = vld [vmem:[#allocation20 + $0x24] sm:$0xf0] }
 0x27e   :  { %v1660_v48 = vor.u32 %v1798_v35, %v1659_v44  ;;  %v1046_v44 = vld [vmem:[%s2419_s17] sm:$0x3] }
 0x27f   :  { %v1048_v35 = vperm.slane %v1046_v44, 0 }
 0x280   :  { %1133 = vmatpush.bf16.msra.mxu2 %v1660_v48 }
 0x282   :  { %v753_v49 = vpop.f32.mrf.mxu2 }
 0x283   :  { %v754_v50 = vadd.f32 %v753_v49, %v648_v47  ;;  %v1661_v47 = vld [vmem:[#allocation20 + $0x68] sm:$0xf0] }
 0x284   :  { %v742_v52 = vpop.f32.mrf.mxu1  ;;  %v1664_v49 = vor.u32 %v1797_v46, %v1661_v47 }
 0x285   :  { %v760_v54 = vand.u32 2147483647, %v754_v50  ;;  %v757_v4 = vmax.f32 %v754_v50, 0.0  ;;  %vm758_vm1 = vcmp.ne.f32.partialorder %v754_v50, %v754_v50  ;;  %v1796_v52 = vld [vmem:[#allocation20 + $0x54] sm:$0xf0] }
 0x286   :  { %1146 = vmatpush.bf16.msra.mxu3 %v1664_v49 }
 0x287   :  { %v761_v56 = vsub.f32 0.0, %v760_v54  ;;  %v1795_v54 = vld [vmem:[#allocation20 + $0x54] sm:$0xf] }
 0x289   :  { %v762_v57 = vmul.f32 1.442695, %v761_v56 }
 0x28a   :  { %v755_v58 = vpop.f32.mrf.mxu2 }
 0x28b   :  { %1835 = vpow2.f32 %v762_v57  ;;  %v1656_v57 = vor.u32 %v1795_v54, %v1653_v55  ;;  %v1643_v58 = vld [vmem:[#allocation20 + $0x40] sm:$0xf]  ;;  %v1834_v54 = vld [vmem:[%s2421_s19] ss:$0 sm:$0xff]  ;;  %s2190_s19 = smov [#allocation23]  }
 0x28c   :  { %s1271_s30 = sshll.u32 %s2190_s19, 4  ;;  %s1272_s30 = int_to_ptr.vmem [resolvable:$true] %s1271_s30 }
 0x28d   :  { %1147 = vmatpush.bf16.msra.mxu3 %v1656_v57 }
 0x291   :  { %v1836_v59 = vpop.eup %1835 }
 0x292   :  { %v764_v60 = vadd.f32 1.0, %v1836_v59  ;;  %v767_v61 = vmul.f32 -0.5, %v1836_v59  ;;  %v770_v0 = vand.u32 2147483647, %v1836_v59 }
 0x294   :  { %1837 = vlog2.f32 %v764_v60  ;;  %v768_v63 = vadd.f32 1.0, %v767_v61  ;;  %vm771_vm0 = vcmp.lt.f32.partialorder %v770_v0, 0.0004427343  ;;  %v1793_v60 = vld [vmem:[#allocation20 + $0x44] sm:$0xf] }
 0x295   :  { %v1645_v61 = vld [vmem:[#allocation20 + $0x48] sm:$0xf0] }
 0x296   :  { %v769_v3 = vmul.f32 %v1836_v59, %v768_v63  ;;  %v1794_v59 = vld [vmem:[#allocation20 + $0x44] sm:$0xf0]  ;;  %v1648_v0 = vor.u32 %v1793_v60, %v1645_v61 }
 0x297   :  { %v1644_v63 = vor.u32 %v1794_v59, %v1643_v58  ;;  %v1049_v59 = vperm.slane %v1046_v44, 1 }
 0x298   :  { %1148 = vmatpush.bf16.msra.mxu3 %v1648_v0  ;;  %v1242_v0 = vstv %s2432_s27 }
 0x29a   :  { %v1838_v1 = vpop.eup %1837 }
 0x29b   :  { %v766_v2 = vmul.f32 0.6931472, %v1838_v1  ;;  %v1635_v1 = vld [vmem:[#allocation20 + $0x30] sm:$0xf] }
 0x29d   :  { %v772_v5 = vsel %vm771_vm0, %v769_v3, %v766_v2  ;;  %v1792_v2 = vld [vmem:[#allocation20 + $0x34] sm:$0xf0]  ;;  %v1791_v3 = vld [vmem:[#allocation20 + $0x34] sm:$0xf] }
 0x29e   :  { %v773_v6 = vadd.f32 %v772_v5, %v757_v4  ;;  %v1637_v4 = vld [vmem:[#allocation20 + $0x38] sm:$0xf0]  ;;  %v1636_v5 = vor.u32 %v1792_v2, %v1635_v1 }
 0x2a0   :  { %v774_v7 = vsel %vm758_vm1, %v754_v50, %v773_v6  ;;  %v1651_v50 = vld [vmem:[#allocation20 + $0x50] sm:$0xf]  ;;  %v1640_v6 = vor.u32 %v1791_v3, %v1637_v4 }
 0x2a1   :  { %v775_v9 = vmax.f32 %v774_v7, 0.01  ;;  %v1652_v56 = vor.u32 %v1796_v52, %v1651_v50  ;;  %v1627_v7 = vld [vmem:[#allocation20 + $0x20] sm:$0xf] }
 0x2a2   :  { %1149 = vmatpush.bf16.msra.mxu3 %v1640_v6 }
 0x2a3   :  { %v776_v10 = vmin.f32 %v775_v9, 0.6  ;;  %1134 = vmatpush.bf16.msra.mxu2 %v1652_v56  ;;  %v1789_v9 = vld [vmem:[#allocation20 + $0x24] sm:$0xf] }
 0x2a5   :  { %1254 = vrot.lane.b32.xlu1 %v776_v10, %s2189_s9  ;;  %v777_v12 = vmul.f32 %v776_v10, %v2351_v51  ;;  %v1784_v51 = vld [vmem:[#allocation18 + $0x38] sm:$0xff]  ;;  %v1629_v10 = vld [vmem:[#allocation20 + $0x28] sm:$0xf0] }
 0x2a6   :  { %1015 = vmatpush.bf16.msra.mxu1 %v1784_v51  ;;  %v1620_v51 = vor.u32 %v1788_v21, %v1619_v20 }
 0x2a7   :  { %v778_v13 = vadd.f32 %v777_v12, %v2372_v11  ;;  %1135 = vmatpush.bf16.msra.mxu2 %v1644_v63  ;;  %v1628_v12 = vor.u32 %v1790_v8, %v1627_v7 }
 0x2a9   :  { %v779_v14 = vpack.c.bf16 %v778_v13, %v778_v13  ;;  %v1632_v13 = vor.u32 %v1789_v9, %v1629_v10 }
 0x2aa   :  { %1016 = vmatpush.bf16.msra.mxu1 %v1783_v23  ;;  %v1621_v23 = vld [vmem:[#allocation20 + $0x18] sm:$0xf0] }
 0x2ab   :  { %856 = vmatmul.bf16.vlgmr.msrb.gmra.mxu3 %v779_v14  ;;  %1136 = vmatpush.bf16.msra.mxu2 %v1636_v5  ;;  %v1832_v14 = vld [vmem:[%s2415_s13] ss:$0 sm:$0xff] }
 0x2ac   :  { %1150 = vmatpush.bf16.msra.mxu3 %v1632_v13 }
 0x2ae   :  { %1017 = vmatpush.bf16.msra.mxu1 %v1782_v53  ;;  %v1624_v53 = vor.u32 %v1787_v22, %v1621_v23 }
 0x2af   :  { %1137 = vmatpush.bf16.msra.mxu2 %v1628_v12 }
 0x2b0   :  { %1151 = vmatpush.bf16.msra.mxu3 %v1624_v53 }
 0x2b2   :  { %1018 = vmatpush.bf16.msra.mxu1 %v1781_v24  ;;  %v1611_v24 = vld [vmem:[#allocation20] sm:$0xf] }
 0x2b3   :  { %1138 = vmatpush.bf16.msra.mxu2 %v1620_v51 }
 0x2b6   :  { %1019 = vmatpush.bf16.msra.mxu1 %v1780_v25  ;;  %v1786_v25 = vld [vmem:[#allocation20 + $0x4] sm:$0xf0] }
 0x2ba   :  { %1020 = vmatpush.bf16.msra.mxu1 %v1779_v27  ;;  %v1612_v27 = vor.u32 %v1786_v25, %v1611_v24 }
 0x2bc   :  { %1139 = vmatpush.bf16.msra.mxu2 %v1612_v27 }
 0x2be   :  { %1021 = vmatpush.bf16.msra.mxu1 %v1778_v38 }
 0x2c2   :  { %1022 = vmatpush.bf16.msra.mxu1 %v1777_v62 }
 0x317   :  { %v1255_v3 = vpop.permute.xlu1 %1254 }
 0x32e   :  { %v857_v30 = vpop.f32.mrf.mxu3 }
 0x32f   :  { %v858_v31 = vadd.f32 %v1831_v28, %v857_v30  ;;  %v1613_v28 = vld [vmem:[#allocation20 + $0x8] sm:$0xf0]  ;;  %v1808_v30 = vld [vmem:[#allocation21 + $0x38] sm:$0xff] }
 0x330   :  { %v1616_v29 = vor.u32 %v1785_v26, %v1613_v28  ;;  %1228 = vmatpush.bf16.msrb.mxu0 %v1808_v30 }
 0x331   :  { %v861_v33 = vmax.f32 %v858_v31, 0.0  ;;  %v1807_v31 = vld [vmem:[#allocation21 + $0x30] sm:$0xff] }
 0x332   :  { %1152 = vmatpush.bf16.msra.mxu3 %v1616_v29 }
 0x333   :  { %v862_v34 = vmul.f32 %v861_v33, %v459_v32  ;;  %v1806_v32 = vld [vmem:[#allocation21 + $0x28] sm:$0xff]  ;;  %v1805_v33 = vld [vmem:[#allocation21 + $0x20] sm:$0xff] }
 0x334   :  { %1229 = vmatpush.bf16.msrb.mxu0 %v1807_v31 }
 0x335   :  { %v863_v36 = vpack.c.bf16 %v862_v34, %v862_v34  ;;  %v1804_v34 = vld [vmem:[#allocation21 + $0x18] sm:$0xff] }
 0x336   :  { %v859_v37 = vpop.f32.mrf.mxu3 }
 0x337   :  { %940 = vmatmul.bf16.vlgmr.msra.gmra.mxu0 %v863_v36  ;;  %v1803_v36 = vld [vmem:[#allocation21 + $0x10] sm:$0xff] }
 0x338   :  { %1230 = vmatpush.bf16.msrb.mxu0 %v1806_v32  ;;  %v1833_v37 = vld [vmem:[%s2417_s15] ss:$0 sm:$0xff] }
 0x33c   :  { %1231 = vmatpush.bf16.msrb.mxu0 %v1805_v33 }
 0x340   :  { %1232 = vmatpush.bf16.msrb.mxu0 %v1804_v34 }
 0x344   :  { %1233 = vmatpush.bf16.msrb.mxu0 %v1803_v36 }
 0x348   :  { %1234 = vmatpush.bf16.msrb.mxu0 %v1802_v42 }
 0x34c   :  { %1235 = vmatpush.bf16.msrb.mxu0 %v1801_v43 }
 0x3b4   :  { %v941_v15 = vpop.f32.mrf.mxu0 }
 0x3b5   :  { %v942_v16 = vadd.f32 %v1832_v14, %v941_v15 }
 0x3b7   :  { %v945_v17 = vmax.f32 %v942_v16, 0.0 }
 0x3b9   :  { %v946_v18 = vpack.c.bf16 %v945_v17, %v945_v17 }
 0x3bb   :  { %1023 = vmatmul.bf16.vlgmr.msra.gmra.mxu1 %v946_v18 }
 0x3bc   :  { %v943_v19 = vpop.f32.mrf.mxu0 }
 0x438   :  { %v1024_v38 = vpop.f32.mrf.mxu1 }
 0x439   :  { %v1025_v62 = vadd.f32 %v1833_v37, %v1024_v38 }
 0x43b   :  { %v1028_v39 = vmax.f32 %v1025_v62, 0.0 }
 0x43d   :  { %v1029_v40 = vpack.c.bf16 %v1028_v39, %v1028_v39 }
 0x43f   :  { %1140 = vmatmul.bf16.vlgmr.msra.gmra.mxu2 %v1029_v40  ;;  %1153 = vmatmul.bf16.vlgmr.msra.gmra.mxu3 %v1029_v40 }
 0x440   :  { %v1026_v41 = vpop.f32.mrf.mxu1 }
 0x4c2   :  { %v1141_v45 = vpop.f32.mrf.mxu2  ;;  %v1154_v46 = vpop.f32.mrf.mxu3 }
 0x4c3   :  { %v1142_v47 = vadd.f32 %v1141_v45, %v1048_v35  ;;  %v1155_v60 = vadd.f32 %v1154_v46, %v1049_v59 }
 0x4c5   :  { %v1158_v48 = vmax.f32 %v1142_v47, 0.0 }
 0x4c7   :  { %v1159_v49 = vpack.c.bf16 %v1158_v48, %v1158_v48 }
 0x4c9   :  { %1236 = vmatmul.bf16.vlgmr.msrb.gmra.mxu0 %v1159_v49 }
 0x4ca   :  { %v1143_v50 = vpop.f32.mrf.mxu2  ;;  %v1156_v52 = vpop.f32.mrf.mxu3 }
 0x546   :  { %v1237_v55 = vpop.f32.mrf.mxu0 }
 0x547   :  { %v1238_v56 = vadd.f32 %v1834_v54, %v1237_v55 }
 0x549   :  { %1839 = vtanh.f32 %v1238_v56 }
 0x54a   :  { %1841 = vtanh.f32 %v1155_v60 }
 0x54e   :  { %v1239_v57 = vpop.f32.mrf.mxu0 }
 0x54f   :  { %v1840_v58 = vpop.eup %1839 }
 0x550   :  { %1246 = vrot.lane.b32.xlu0 %v1840_v58, %s2178_s0  ;;  %v1842_v63 = vpop.eup %1841 }
 0x551   :  { %v1243_v1 = vmul.f32 %v1842_v63, %v1242_v0 }
 0x558   :  { %1250 = vrot.lane.b32.xlu0 %v2372_v11, %s2173_s4 }
 0x5c2   :  { %v1247_v61 = vpop.permute.xlu0 %1246 }
 0x5c3   :  { %v1258_v11 = vsel %vm1257_vm2, %v1243_v1, %v1247_v61 }
 0x5ca   :  { %v1251_v2 = vpop.permute.xlu0 %1250 }
 0x5cb   :  { %v1260_v4 = vsel %vm1259_vm3, %v1258_v11, %v1251_v2 }
 0x5cc   :  { %v1262_v5 = vsel %vm1261_vm4, %v1260_v4, %v1255_v3 }
 0x5cd   :  { %v1264_v6 = vsel %vm1263_vm5, %v1262_v5, 0.0 }
 0x5ce   :  { %1265 = vst [vmem:[#allocation23] sm:$0xff] %v1264_v6 }
 0x5cf   :  { %1276 = dma.vmem_to_hbm [thread:$0]  %s1272_s30, 128, %s1274_s29, [#allocation5]  }
 0x5d0   :  { %2169 = dma.done.wait [#allocation5], 128  }
 0x5d1   :  { %2170 = vsyncadd [#allocation5], 4294967168 }
 0x5d2   :  { %1281 = vsyncpa [#allocation4], 1 }
 0x5d3   :  { %1282 = vsyncpa [#allocation7], 1 }
 0x5d4   :  { %1283 = vsyncpa [#allocation10], 1 }
 0x5d5   :  { %1284 = vsyncpa [#allocation13], 1 }
 0x5d6   :  { %1285 = vsyncpa [#allocation16], 1 }
 0x5d7   :  { %1286 = vsyncpa [#allocation19], 1 }
 0x5d8   :  { %1287 = vsyncpa [#allocation22], 1 }
 0x5d9   :  { %1288 = vsyncpa [#allocation5], 1 }

</bundles_post_ra>
